<compile_context>
chip_gen: v7x
topology: tpu7x:2x2x1
jax: 0.10.0
libtpu: 0.0.40
codegen_flags: <defaults>
</compile_context>

<pallas_src>
import jax
import jax.numpy as jnp
from jax import lax
from jax.experimental import pallas as pl
from jax.experimental.pallas import tpu as pltpu


def make_dem_kernel(H, W, C):
    Wp = W + 6                # row stride of the zero-padded plane (pad=3 / side)
    L = H * Wp                # flattened output plane length (cols >= W are junk)
    FLAT = (H + 7) * Wp       # padded flat plane; covers the deepest tap read

    def kernel(x_ref, wxy_ref, bxy_ref, wm_ref, bm_ref, wg_ref, bg_ref,
               o_ref, xp_ref, im_ref):
        # ---- zero-padded, row-flattened input plane in VMEM -----------------
        # xp[c, (h+3)*Wp + 3 + w] = x[c, h, w]; zero elsewhere.
        xp_ref[...] = jnp.zeros_like(xp_ref)
        x = x_ref[0]                                   # [C, H, W]
        for h in range(H):
            base = (h + 3) * Wp + 3
            xp_ref[:, base:base + W] = x[:, h, :]

        # ---- shared im2col: 49 lane-shifted flat slices ----------------------
        # row order: (kh, kw, cin) -> row (kh*7 + kw)*C + cin
        for kh in range(7):
            for kw in range(7):
                t = kh * 7 + kw
                s = kh * Wp + kw
                im_ref[t * C:(t + 1) * C, :] = xp_ref[:, s:s + L]

        im49 = im_ref[...]                             # [49C, L]
        # central 3x3 taps (kh, kw in {2,3,4}) feed the fused conv_x / conv_y
        im9 = jnp.concatenate(
            [im_ref[(kh * 7 + 2) * C:(kh * 7 + 5) * C, :] for kh in (2, 3, 4)],
            axis=0)                                    # [9C, L]

        # conv_g: 7x7, C -> C (BN folded) + ReLU
        g = jax.nn.relu(
            jnp.dot(wg_ref[...], im49, preferred_element_type=jnp.float32)
            + bg_ref[...])                             # [C, L]

        # conv_x / conv_y fused: 3x3, C -> C/2 each (BN folded) + ReLU.
        # Output rows 0..C/2-1 are conv_x, C/2..C-1 are conv_y, i.e. exactly
        # torch.cat([conv_x, conv_y], dim=1) in C-major layout.
        xy = jax.nn.relu(
            jnp.dot(wxy_ref[...], im9, preferred_element_type=jnp.float32)
            + bxy_ref[...])                            # [C, L]

        # merge: 1x1 conv on the concatenated branches, then sigmoid
        m = jax.nn.sigmoid(
            jnp.dot(wm_ref[...], xy, preferred_element_type=jnp.float32)
            + bm_ref[...])                             # [C, L]

        o_ref[0] = (m * g).astype(o_ref.dtype)         # lane-dense store

    return kernel, L, FLAT


def detail_enhancement(x_nchw, params):
    """Fused DetailEnhancementModule forward. Input/output are NCHW."""
    x = x_nchw.astype(jnp.float32)
    N, C, H, W = x.shape
    Ch = C // 2
    Wp = W + 6

    kernel, L, FLAT = make_dem_kernel(H, W, C)

    # --- repack (BN-folded) conv weights into C-major matmul form (tiny) -----
    # TODO(synk): ConvFac/Conv2d_h/Conv2d_v definitions were not provided; the
    # directional conv_x/conv_y weights are approximated as plain 3x3 convs.
    wxy = jnp.concatenate([params["wx"], params["wy"]], axis=-1)     # [3,3,C,2Ch]
    wxy2 = jnp.transpose(wxy, (3, 0, 1, 2)).reshape(2 * Ch, 9 * C)   # [C, 9C]
    bxy2 = jnp.concatenate([params["bx"], params["by"]]).reshape(2 * Ch, 1)
    wg2 = jnp.transpose(params["wg"], (3, 0, 1, 2)).reshape(C, 49 * C)
    bg2 = params["bg"].reshape(C, 1)
    wm2 = params["wm"].T                                             # [Cout, Cin]
    bm2 = params["bm"].reshape(C, 1)

    full = lambda a: pl.BlockSpec(a.shape, lambda n: (0,) * a.ndim)

    out_flat = pl.pallas_call(
        kernel,
        out_shape=jax.ShapeDtypeStruct((N, C, L), jnp.float32),
        grid=(N,),
        in_specs=[
            pl.BlockSpec((1, C, H, W), lambda n: (n, 0, 0, 0)),  # NCHW, unpadded
            full(wxy2), full(bxy2),                              # fused conv_x/conv_y
            full(wm2), full(bm2),                                # merge 1x1
            full(wg2), full(bg2),                                # conv_g 7x7
        ],
        out_specs=pl.BlockSpec((1, C, L), lambda n: (n, 0, 0)),  # lane-dense
        scratch_shapes=[
            pltpu.VMEM((C, FLAT), jnp.float32),        # padded flat input plane
            pltpu.VMEM((49 * C, L), jnp.float32),      # shared im2col
        ],
        compiler_params=pltpu.CompilerParams(
            dimension_semantics=("parallel",)),
        # TODO(synk): for large H on v7x, add a banded spatial grid axis (halo=3)
        # sized for 64 MiB VMEM; at these shapes one image fits trivially.
    )(x, wxy2, bxy2, wm2, bm2, wg2, bg2)

    # Drop the 6 junk columns per flattened row: [N,C,H*Wp] -> [N,C,H,W] (NCHW).
    return out_flat.reshape(N, C, H, Wp)[:, :, :, :W]


# ---------------- parameter setup (plain JAX glue) ----------------

def fold_bn(w_hwio, b, gamma, beta, mean, var, eps=1e-5):
    scale = gamma / jnp.sqrt(var + eps)
    return w_hwio * scale, (b - mean) * scale + beta


def init_params(key, C):
    Ch = C // 2
    ks = jax.random.split(key, 24)
    i = iter(range(24))
    nrm = lambda shp, s=0.1: s * jax.random.normal(ks[next(i)], shp, jnp.float32)

    def bn(cout):
        gamma = 1.0 + nrm((cout,))
        beta = nrm((cout,))
        mean = nrm((cout,))
        var = jnp.abs(jax.random.normal(ks[next(i)], (cout,), jnp.float32)) + 0.5
        return gamma, beta, mean, var

    # conv_x: 3x3, C -> C//2, pad=1, + BN + ReLU
    wx, bx = fold_bn(nrm((3, 3, C, Ch)), nrm((Ch,)), *bn(Ch))
    # conv_y: 3x3, C -> C//2, pad=1, + BN + ReLU
    wy, by = fold_bn(nrm((3, 3, C, Ch)), nrm((Ch,)), *bn(Ch))
    # merge: 1x1, C -> C (no BN).  wm is [Cin, Cout].
    wm = nrm((C, C))
    bm = nrm((C,))
    # conv_g: 7x7, C -> C, pad=3, + BN + ReLU
    wg, bg = fold_bn(nrm((7, 7, C, C)), nrm((C,)), *bn(C))

    return dict(wx=wx, bx=bx, wy=wy, by=by, wm=wm, bm=bm, wg=wg, bg=bg)


# ---------------- pure-JAX reference for validation ----------------

def ref_forward(x_nchw, p):
    def conv(x, w, b, pad):
        y = lax.conv_general_dilated(
            x, w, window_strides=(1, 1), padding=[(pad, pad), (pad, pad)],
            dimension_numbers=("NCHW", "HWIO", "NCHW"),
            precision=lax.Precision.HIGHEST)
        return y + b[None, :, None, None]

    cx = jax.nn.relu(conv(x_nchw, p["wx"], p["bx"], 1))
    cy = jax.nn.relu(conv(x_nchw, p["wy"], p["by"], 1))
    cat = jnp.concatenate([cx, cy], axis=1)
    merge = jax.nn.sigmoid(
        jnp.einsum("nchw,cd->ndhw", cat, p["wm"],
                   precision=lax.Precision.HIGHEST)
        + p["bm"][None, :, None, None])
    cg = jax.nn.relu(conv(x_nchw, p["wg"], p["bg"], 3))
    return merge * cg


if __name__ == "__main__":
    key = jax.random.PRNGKey(0)
    k_x, k_p = jax.random.split(key)

    N, C, H, W = 2, 8, 16, 16
    x = jax.random.normal(k_x, (N, C, H, W), jnp.float32)       # NCHW, like PyTorch
    params = init_params(k_p, C)

    out = jax.jit(detail_enhancement)(x, params)
    jax.block_until_ready(out)

    ref = ref_forward(x, params)
    assert out.shape == (N, C, H, W), out.shape
    assert jnp.allclose(out, ref, rtol=1e-2, atol=1e-2), (
        float(jnp.max(jnp.abs(out - ref))))

    print("KERNEL_OK")
</pallas_src>

<mosaic_0001>
module attributes {stable_mosaic.version = 11 : i64} {
  func.func @kernel(%arg0: i32, %arg1: memref<1x8x16x16xf32, #tpu.memory_space<vmem>>, %arg2: memref<8x72xf32, #tpu.memory_space<vmem>>, %arg3: memref<8x1xf32, #tpu.memory_space<vmem>>, %arg4: memref<8x8xf32, #tpu.memory_space<vmem>>, %arg5: memref<8x1xf32, #tpu.memory_space<vmem>>, %arg6: memref<8x392xf32, #tpu.memory_space<vmem>>, %arg7: memref<8x1xf32, #tpu.memory_space<vmem>>, %arg8: memref<1x8x352xf32, #tpu.memory_space<vmem>>, %arg9: memref<8x506xf32, #tpu.memory_space<vmem>>, %arg10: memref<392x352xf32, #tpu.memory_space<vmem>>) attributes {dimension_semantics = [#tpu.dimension_semantics<parallel>], iteration_bounds = array<i64: 2>, scalar_prefetch = 0 : i64, scratch_operands = 2 : i64, tpu.core_type = #tpu.core_type<tc>, window_params = [{transform_indices = @transform_0, window_bounds = array<i64: 1, 8, 16, 16>}, {pipeline_mode = #tpu.pipeline_mode<synchronous>, transform_indices = @transform_1, window_bounds = array<i64: 8, 72>}, {pipeline_mode = #tpu.pipeline_mode<synchronous>, transform_indices = @transform_2, window_bounds = array<i64: 8, 1>}, {pipeline_mode = #tpu.pipeline_mode<synchronous>, transform_indices = @transform_3, window_bounds = array<i64: 8, 8>}, {pipeline_mode = #tpu.pipeline_mode<synchronous>, transform_indices = @transform_4, window_bounds = array<i64: 8, 1>}, {pipeline_mode = #tpu.pipeline_mode<synchronous>, transform_indices = @transform_5, window_bounds = array<i64: 8, 392>}, {pipeline_mode = #tpu.pipeline_mode<synchronous>, transform_indices = @transform_6, window_bounds = array<i64: 8, 1>}, {transform_indices = @transform_7, window_bounds = array<i64: 1, 8, 352>}]} {
    %cst = arith.constant 0.000000e+00 : f32
    %0 = vector.broadcast %cst : f32 to vector<8x506xf32>
    %c0 = arith.constant 0 : index
    %c0_0 = arith.constant 0 : index
    %1 = vector.load %arg9[%c0, %c0_0] : memref<8x506xf32, #tpu.memory_space<vmem>>, vector<8x506xf32>
    tpu.vector_store %arg9[%c0, %c0_0], %0 {strides = array<i32>} : memref<8x506xf32, #tpu.memory_space<vmem>>, vector<8x506xf32>,
    %c0_1 = arith.constant 0 : index
    %c0_2 = arith.constant 0 : index
    %c0_3 = arith.constant 0 : index
    %c0_4 = arith.constant 0 : index
    %2 = vector.load %arg1[%c0_1, %c0_2, %c0_3, %c0_4] : memref<1x8x16x16xf32, #tpu.memory_space<vmem>>, vector<1x8x16x16xf32>
    %3 = vector.shape_cast %2 : vector<1x8x16x16xf32> to vector<8x16x16xf32>
    %4 = vector.extract_strided_slice %3 {offsets = [0, 0, 0], sizes = [8, 1, 16], strides = [1, 1, 1]} : vector<8x16x16xf32> to vector<8x1x16xf32>
    %5 = vector.shape_cast %4 : vector<8x1x16xf32> to vector<8x16xf32>
    %c0_5 = arith.constant 0 : index
    %c69 = arith.constant 69 : index
    %6 = vector.load %arg9[%c0_5, %c69] : memref<8x506xf32, #tpu.memory_space<vmem>>, vector<8x16xf32>
    tpu.vector_store %arg9[%c0_5, %c69], %5 {strides = array<i32>} : memref<8x506xf32, #tpu.memory_space<vmem>>, vector<8x16xf32>,
    %7 = vector.extract_strided_slice %3 {offsets = [0, 1, 0], sizes = [8, 1, 16], strides = [1, 1, 1]} : vector<8x16x16xf32> to vector<8x1x16xf32>
    %8 = vector.shape_cast %7 : vector<8x1x16xf32> to vector<8x16xf32>
    %c0_6 = arith.constant 0 : index
    %c91 = arith.constant 91 : index
    %9 = vector.load %arg9[%c0_6, %c91] : memref<8x506xf32, #tpu.memory_space<vmem>>, vector<8x16xf32>
    tpu.vector_store %arg9[%c0_6, %c91], %8 {strides = array<i32>} : memref<8x506xf32, #tpu.memory_space<vmem>>, vector<8x16xf32>,
    %10 = vector.extract_strided_slice %3 {offsets = [0, 2, 0], sizes = [8, 1, 16], strides = [1, 1, 1]} : vector<8x16x16xf32> to vector<8x1x16xf32>
    %11 = vector.shape_cast %10 : vector<8x1x16xf32> to vector<8x16xf32>
    %c0_7 = arith.constant 0 : index
    %c113 = arith.constant 113 : index
    %12 = vector.load %arg9[%c0_7, %c113] : memref<8x506xf32, #tpu.memory_space<vmem>>, vector<8x16xf32>
    tpu.vector_store %arg9[%c0_7, %c113], %11 {strides = array<i32>} : memref<8x506xf32, #tpu.memory_space<vmem>>, vector<8x16xf32>,
    %13 = vector.extract_strided_slice %3 {offsets = [0, 3, 0], sizes = [8, 1, 16], strides = [1, 1, 1]} : vector<8x16x16xf32> to vector<8x1x16xf32>
    %14 = vector.shape_cast %13 : vector<8x1x16xf32> to vector<8x16xf32>
    %c0_8 = arith.constant 0 : index
    %c135 = arith.constant 135 : index
    %15 = vector.load %arg9[%c0_8, %c135] : memref<8x506xf32, #tpu.memory_space<vmem>>, vector<8x16xf32>
    tpu.vector_store %arg9[%c0_8, %c135], %14 {strides = array<i32>} : memref<8x506xf32, #tpu.memory_space<vmem>>, vector<8x16xf32>,
    %16 = vector.extract_strided_slice %3 {offsets = [0, 4, 0], sizes = [8, 1, 16], strides = [1, 1, 1]} : vector<8x16x16xf32> to vector<8x1x16xf32>
    %17 = vector.shape_cast %16 : vector<8x1x16xf32> to vector<8x16xf32>
    %c0_9 = arith.constant 0 : index
    %c157 = arith.constant 157 : index
    %18 = vector.load %arg9[%c0_9, %c157] : memref<8x506xf32, #tpu.memory_space<vmem>>, vector<8x16xf32>
    tpu.vector_store %arg9[%c0_9, %c157], %17 {strides = array<i32>} : memref<8x506xf32, #tpu.memory_space<vmem>>, vector<8x16xf32>,
    %19 = vector.extract_strided_slice %3 {offsets = [0, 5, 0], sizes = [8, 1, 16], strides = [1, 1, 1]} : vector<8x16x16xf32> to vector<8x1x16xf32>
    %20 = vector.shape_cast %19 : vector<8x1x16xf32> to vector<8x16xf32>
    %c0_10 = arith.constant 0 : index
    %c179 = arith.constant 179 : index
    %21 = vector.load %arg9[%c0_10, %c179] : memref<8x506xf32, #tpu.memory_space<vmem>>, vector<8x16xf32>
    tpu.vector_store %arg9[%c0_10, %c179], %20 {strides = array<i32>} : memref<8x506xf32, #tpu.memory_space<vmem>>, vector<8x16xf32>,
    %22 = vector.extract_strided_slice %3 {offsets = [0, 6, 0], sizes = [8, 1, 16], strides = [1, 1, 1]} : vector<8x16x16xf32> to vector<8x1x16xf32>
    %23 = vector.shape_cast %22 : vector<8x1x16xf32> to vector<8x16xf32>
    %c0_11 = arith.constant 0 : index
    %c201 = arith.constant 201 : index
    %24 = vector.load %arg9[%c0_11, %c201] : memref<8x506xf32, #tpu.memory_space<vmem>>, vector<8x16xf32>
    tpu.vector_store %arg9[%c0_11, %c201], %23 {strides = array<i32>} : memref<8x506xf32, #tpu.memory_space<vmem>>, vector<8x16xf32>,
    %25 = vector.extract_strided_slice %3 {offsets = [0, 7, 0], sizes = [8, 1, 16], strides = [1, 1, 1]} : vector<8x16x16xf32> to vector<8x1x16xf32>
    %26 = vector.shape_cast %25 : vector<8x1x16xf32> to vector<8x16xf32>
    %c0_12 = arith.constant 0 : index
    %c223 = arith.constant 223 : index
    %27 = vector.load %arg9[%c0_12, %c223] : memref<8x506xf32, #tpu.memory_space<vmem>>, vector<8x16xf32>
    tpu.vector_store %arg9[%c0_12, %c223], %26 {strides = array<i32>} : memref<8x506xf32, #tpu.memory_space<vmem>>, vector<8x16xf32>,
    %28 = vector.extract_strided_slice %3 {offsets = [0, 8, 0], sizes = [8, 1, 16], strides = [1, 1, 1]} : vector<8x16x16xf32> to vector<8x1x16xf32>
    %29 = vector.shape_cast %28 : vector<8x1x16xf32> to vector<8x16xf32>
    %c0_13 = arith.constant 0 : index
    %c245 = arith.constant 245 : index
    %30 = vector.load %arg9[%c0_13, %c245] : memref<8x506xf32, #tpu.memory_space<vmem>>, vector<8x16xf32>
    tpu.vector_store %arg9[%c0_13, %c245], %29 {strides = array<i32>} : memref<8x506xf32, #tpu.memory_space<vmem>>, vector<8x16xf32>,
    %31 = vector.extract_strided_slice %3 {offsets = [0, 9, 0], sizes = [8, 1, 16], strides = [1, 1, 1]} : vector<8x16x16xf32> to vector<8x1x16xf32>
    %32 = vector.shape_cast %31 : vector<8x1x16xf32> to vector<8x16xf32>
    %c0_14 = arith.constant 0 : index
    %c267 = arith.constant 267 : index
    %33 = vector.load %arg9[%c0_14, %c267] : memref<8x506xf32, #tpu.memory_space<vmem>>, vector<8x16xf32>
    tpu.vector_store %arg9[%c0_14, %c267], %32 {strides = array<i32>} : memref<8x506xf32, #tpu.memory_space<vmem>>, vector<8x16xf32>,
    %34 = vector.extract_strided_slice %3 {offsets = [0, 10, 0], sizes = [8, 1, 16], strides = [1, 1, 1]} : vector<8x16x16xf32> to vector<8x1x16xf32>
    %35 = vector.shape_cast %34 : vector<8x1x16xf32> to vector<8x16xf32>
    %c0_15 = arith.constant 0 : index
    %c289 = arith.constant 289 : index
    %36 = vector.load %arg9[%c0_15, %c289] : memref<8x506xf32, #tpu.memory_space<vmem>>, vector<8x16xf32>
    tpu.vector_store %arg9[%c0_15, %c289], %35 {strides = array<i32>} : memref<8x506xf32, #tpu.memory_space<vmem>>, vector<8x16xf32>,
    %37 = vector.extract_strided_slice %3 {offsets = [0, 11, 0], sizes = [8, 1, 16], strides = [1, 1, 1]} : vector<8x16x16xf32> to vector<8x1x16xf32>
    %38 = vector.shape_cast %37 : vector<8x1x16xf32> to vector<8x16xf32>
    %c0_16 = arith.constant 0 : index
    %c311 = arith.constant 311 : index
    %39 = vector.load %arg9[%c0_16, %c311] : memref<8x506xf32, #tpu.memory_space<vmem>>, vector<8x16xf32>
    tpu.vector_store %arg9[%c0_16, %c311], %38 {strides = array<i32>} : memref<8x506xf32, #tpu.memory_space<vmem>>, vector<8x16xf32>,
    %40 = vector.extract_strided_slice %3 {offsets = [0, 12, 0], sizes = [8, 1, 16], strides = [1, 1, 1]} : vector<8x16x16xf32> to vector<8x1x16xf32>
    %41 = vector.shape_cast %40 : vector<8x1x16xf32> to vector<8x16xf32>
    %c0_17 = arith.constant 0 : index
    %c333 = arith.constant 333 : index
    %42 = vector.load %arg9[%c0_17, %c333] : memref<8x506xf32, #tpu.memory_space<vmem>>, vector<8x16xf32>
    tpu.vector_store %arg9[%c0_17, %c333], %41 {strides = array<i32>} : memref<8x506xf32, #tpu.memory_space<vmem>>, vector<8x16xf32>,
    %43 = vector.extract_strided_slice %3 {offsets = [0, 13, 0], sizes = [8, 1, 16], strides = [1, 1, 1]} : vector<8x16x16xf32> to vector<8x1x16xf32>
    %44 = vector.shape_cast %43 : vector<8x1x16xf32> to vector<8x16xf32>
    %c0_18 = arith.constant 0 : index
    %c355 = arith.constant 355 : index
    %45 = vector.load %arg9[%c0_18, %c355] : memref<8x506xf32, #tpu.memory_space<vmem>>, vector<8x16xf32>
    tpu.vector_store %arg9[%c0_18, %c355], %44 {strides = array<i32>} : memref<8x506xf32, #tpu.memory_space<vmem>>, vector<8x16xf32>,
    %46 = vector.extract_strided_slice %3 {offsets = [0, 14, 0], sizes = [8, 1, 16], strides = [1, 1, 1]} : vector<8x16x16xf32> to vector<8x1x16xf32>
    %47 = vector.shape_cast %46 : vector<8x1x16xf32> to vector<8x16xf32>
    %c0_19 = arith.constant 0 : index
    %c377 = arith.constant 377 : index
    %48 = vector.load %arg9[%c0_19, %c377] : memref<8x506xf32, #tpu.memory_space<vmem>>, vector<8x16xf32>
    tpu.vector_store %arg9[%c0_19, %c377], %47 {strides = array<i32>} : memref<8x506xf32, #tpu.memory_space<vmem>>, vector<8x16xf32>,
    %49 = vector.extract_strided_slice %3 {offsets = [0, 15, 0], sizes = [8, 1, 16], strides = [1, 1, 1]} : vector<8x16x16xf32> to vector<8x1x16xf32>
    %50 = vector.shape_cast %49 : vector<8x1x16xf32> to vector<8x16xf32>
    %c0_20 = arith.constant 0 : index
    %c399 = arith.constant 399 : index
    %51 = vector.load %arg9[%c0_20, %c399] : memref<8x506xf32, #tpu.memory_space<vmem>>, vector<8x16xf32>
    tpu.vector_store %arg9[%c0_20, %c399], %50 {strides = array<i32>} : memref<8x506xf32, #tpu.memory_space<vmem>>, vector<8x16xf32>,
    %c0_21 = arith.constant 0 : index
    %c0_22 = arith.constant 0 : index
    %52 = vector.load %arg9[%c0_21, %c0_22] : memref<8x506xf32, #tpu.memory_space<vmem>>, vector<8x352xf32>
    %c0_23 = arith.constant 0 : index
    %c0_24 = arith.constant 0 : index
    %53 = vector.load %arg10[%c0_23, %c0_24] : memref<392x352xf32, #tpu.memory_space<vmem>>, vector<8x352xf32>
    tpu.vector_store %arg10[%c0_23, %c0_24], %52 {strides = array<i32>} : memref<392x352xf32, #tpu.memory_space<vmem>>, vector<8x352xf32>,
    %c0_25 = arith.constant 0 : index
    %c1 = arith.constant 1 : index
    %54 = vector.load %arg9[%c0_25, %c1] : memref<8x506xf32, #tpu.memory_space<vmem>>, vector<8x352xf32>
    %c8 = arith.constant 8 : index
    %c0_26 = arith.constant 0 : index
    %55 = vector.load %arg10[%c8, %c0_26] : memref<392x352xf32, #tpu.memory_space<vmem>>, vector<8x352xf32>
    tpu.vector_store %arg10[%c8, %c0_26], %54 {strides = array<i32>} : memref<392x352xf32, #tpu.memory_space<vmem>>, vector<8x352xf32>,
    %c0_27 = arith.constant 0 : index
    %c2 = arith.constant 2 : index
    %56 = vector.load %arg9[%c0_27, %c2] : memref<8x506xf32, #tpu.memory_space<vmem>>, vector<8x352xf32>
    %c16 = arith.constant 16 : index
    %c0_28 = arith.constant 0 : index
    %57 = vector.load %arg10[%c16, %c0_28] : memref<392x352xf32, #tpu.memory_space<vmem>>, vector<8x352xf32>
    tpu.vector_store %arg10[%c16, %c0_28], %56 {strides = array<i32>} : memref<392x352xf32, #tpu.memory_space<vmem>>, vector<8x352xf32>,
    %c0_29 = arith.constant 0 : index
    %c3 = arith.constant 3 : index
    %58 = vector.load %arg9[%c0_29, %c3] : memref<8x506xf32, #tpu.memory_space<vmem>>, vector<8x352xf32>
    %c24 = arith.constant 24 : index
    %c0_30 = arith.constant 0 : index
    %59 = vector.load %arg10[%c24, %c0_30] : memref<392x352xf32, #tpu.memory_space<vmem>>, vector<8x352xf32>
    tpu.vector_store %arg10[%c24, %c0_30], %58 {strides = array<i32>} : memref<392x352xf32, #tpu.memory_space<vmem>>, vector<8x352xf32>,
    %c0_31 = arith.constant 0 : index
    %c4 = arith.constant 4 : index
    %60 = vector.load %arg9[%c0_31, %c4] : memref<8x506xf32, #tpu.memory_space<vmem>>, vector<8x352xf32>
    %c32 = arith.constant 32 : index
    %c0_32 = arith.constant 0 : index
    %61 = vector.load %arg10[%c32, %c0_32] : memref<392x352xf32, #tpu.memory_space<vmem>>, vector<8x352xf32>
    tpu.vector_store %arg10[%c32, %c0_32], %60 {strides = array<i32>} : memref<392x352xf32, #tpu.memory_space<vmem>>, vector<8x352xf32>,
    %c0_33 = arith.constant 0 : index
    %c5 = arith.constant 5 : index
    %62 = vector.load %arg9[%c0_33, %c5] : memref<8x506xf32, #tpu.memory_space<vmem>>, vector<8x352xf32>
    %c40 = arith.constant 40 : index
    %c0_34 = arith.constant 0 : index
    %63 = vector.load %arg10[%c40, %c0_34] : memref<392x352xf32, #tpu.memory_space<vmem>>, vector<8x352xf32>
    tpu.vector_store %arg10[%c40, %c0_34], %62 {strides = array<i32>} : memref<392x352xf32, #tpu.memory_space<vmem>>, vector<8x352xf32>,
    %c0_35 = arith.constant 0 : index
    %c6 = arith.constant 6 : index
    %64 = vector.load %arg9[%c0_35, %c6] : memref<8x506xf32, #tpu.memory_space<vmem>>, vector<8x352xf32>
    %c48 = arith.constant 48 : index
    %c0_36 = arith.constant 0 : index
    %65 = vector.load %arg10[%c48, %c0_36] : memref<392x352xf32, #tpu.memory_space<vmem>>, vector<8x352xf32>
    tpu.vector_store %arg10[%c48, %c0_36], %64 {strides = array<i32>} : memref<392x352xf32, #tpu.memory_space<vmem>>, vector<8x352xf32>,
    %c0_37 = arith.constant 0 : index
    %c22 = arith.constant 22 : index
    %66 = vector.load %arg9[%c0_37, %c22] : memref<8x506xf32, #tpu.memory_space<vmem>>, vector<8x352xf32>
    %c56 = arith.constant 56 : index
    %c0_38 = arith.constant 0 : index
    %67 = vector.load %arg10[%c56, %c0_38] : memref<392x352xf32, #tpu.memory_space<vmem>>, vector<8x352xf32>
    tpu.vector_store %arg10[%c56, %c0_38], %66 {strides = array<i32>} : memref<392x352xf32, #tpu.memory_space<vmem>>, vector<8x352xf32>,
    %c0_39 = arith.constant 0 : index
    %c23 = arith.constant 23 : index
    %68 = vector.load %arg9[%c0_39, %c23] : memref<8x506xf32, #tpu.memory_space<vmem>>, vector<8x352xf32>
    %c64 = arith.constant 64 : index
    %c0_40 = arith.constant 0 : index
    %69 = vector.load %arg10[%c64, %c0_40] : memref<392x352xf32, #tpu.memory_space<vmem>>, vector<8x352xf32>
    tpu.vector_store %arg10[%c64, %c0_40], %68 {strides = array<i32>} : memref<392x352xf32, #tpu.memory_space<vmem>>, vector<8x352xf32>,
    %c0_41 = arith.constant 0 : index
    %c24_42 = arith.constant 24 : index
    %70 = vector.load %arg9[%c0_41, %c24_42] : memref<8x506xf32, #tpu.memory_space<vmem>>, vector<8x352xf32>
    %c72 = arith.constant 72 : index
    %c0_43 = arith.constant 0 : index
    %71 = vector.load %arg10[%c72, %c0_43] : memref<392x352xf32, #tpu.memory_space<vmem>>, vector<8x352xf32>
    tpu.vector_store %arg10[%c72, %c0_43], %70 {strides = array<i32>} : memref<392x352xf32, #tpu.memory_space<vmem>>, vector<8x352xf32>,
    %c0_44 = arith.constant 0 : index
    %c25 = arith.constant 25 : index
    %72 = vector.load %arg9[%c0_44, %c25] : memref<8x506xf32, #tpu.memory_space<vmem>>, vector<8x352xf32>
    %c80 = arith.constant 80 : index
    %c0_45 = arith.constant 0 : index
    %73 = vector.load %arg10[%c80, %c0_45] : memref<392x352xf32, #tpu.memory_space<vmem>>, vector<8x352xf32>
    tpu.vector_store %arg10[%c80, %c0_45], %72 {strides = array<i32>} : memref<392x352xf32, #tpu.memory_space<vmem>>, vector<8x352xf32>,
    %c0_46 = arith.constant 0 : index
    %c26 = arith.constant 26 : index
    %74 = vector.load %arg9[%c0_46, %c26] : memref<8x506xf32, #tpu.memory_space<vmem>>, vector<8x352xf32>
    %c88 = arith.constant 88 : index
    %c0_47 = arith.constant 0 : index
    %75 = vector.load %arg10[%c88, %c0_47] : memref<392x352xf32, #tpu.memory_space<vmem>>, vector<8x352xf32>
    tpu.vector_store %arg10[%c88, %c0_47], %74 {strides = array<i32>} : memref<392x352xf32, #tpu.memory_space<vmem>>, vector<8x352xf32>,
    %c0_48 = arith.constant 0 : index
    %c27 = arith.constant 27 : index
    %76 = vector.load %arg9[%c0_48, %c27] : memref<8x506xf32, #tpu.memory_space<vmem>>, vector<8x352xf32>
    %c96 = arith.constant 96 : index
    %c0_49 = arith.constant 0 : index
    %77 = vector.load %arg10[%c96, %c0_49] : memref<392x352xf32, #tpu.memory_space<vmem>>, vector<8x352xf32>
    tpu.vector_store %arg10[%c96, %c0_49], %76 {strides = array<i32>} : memref<392x352xf32, #tpu.memory_space<vmem>>, vector<8x352xf32>,
    %c0_50 = arith.constant 0 : index
    %c28 = arith.constant 28 : index
    %78 = vector.load %arg9[%c0_50, %c28] : memref<8x506xf32, #tpu.memory_space<vmem>>, vector<8x352xf32>
    %c104 = arith.constant 104 : index
    %c0_51 = arith.constant 0 : index
    %79 = vector.load %arg10[%c104, %c0_51] : memref<392x352xf32, #tpu.memory_space<vmem>>, vector<8x352xf32>
    tpu.vector_store %arg10[%c104, %c0_51], %78 {strides = array<i32>} : memref<392x352xf32, #tpu.memory_space<vmem>>, vector<8x352xf32>,
    %c0_52 = arith.constant 0 : index
    %c44 = arith.constant 44 : index
    %80 = vector.load %arg9[%c0_52, %c44] : memref<8x506xf32, #tpu.memory_space<vmem>>, vector<8x352xf32>
    %c112 = arith.constant 112 : index
    %c0_53 = arith.constant 0 : index
    %81 = vector.load %arg10[%c112, %c0_53] : memref<392x352xf32, #tpu.memory_space<vmem>>, vector<8x352xf32>
    tpu.vector_store %arg10[%c112, %c0_53], %80 {strides = array<i32>} : memref<392x352xf32, #tpu.memory_space<vmem>>, vector<8x352xf32>,
    %c0_54 = arith.constant 0 : index
    %c45 = arith.constant 45 : index
    %82 = vector.load %arg9[%c0_54, %c45] : memref<8x506xf32, #tpu.memory_space<vmem>>, vector<8x352xf32>
    %c120 = arith.constant 120 : index
    %c0_55 = arith.constant 0 : index
    %83 = vector.load %arg10[%c120, %c0_55] : memref<392x352xf32, #tpu.memory_space<vmem>>, vector<8x352xf32>
    tpu.vector_store %arg10[%c120, %c0_55], %82 {strides = array<i32>} : memref<392x352xf32, #tpu.memory_space<vmem>>, vector<8x352xf32>,
    %c0_56 = arith.constant 0 : index
    %c46 = arith.constant 46 : index
    %84 = vector.load %arg9[%c0_56, %c46] : memref<8x506xf32, #tpu.memory_space<vmem>>, vector<8x352xf32>
    %c128 = arith.constant 128 : index
    %c0_57 = arith.constant 0 : index
    %85 = vector.load %arg10[%c128, %c0_57] : memref<392x352xf32, #tpu.memory_space<vmem>>, vector<8x352xf32>
    tpu.vector_store %arg10[%c128, %c0_57], %84 {strides = array<i32>} : memref<392x352xf32, #tpu.memory_space<vmem>>, vector<8x352xf32>,
    %c0_58 = arith.constant 0 : index
    %c47 = arith.constant 47 : index
    %86 = vector.load %arg9[%c0_58, %c47] : memref<8x506xf32, #tpu.memory_space<vmem>>, vector<8x352xf32>
    %c136 = arith.constant 136 : index
    %c0_59 = arith.constant 0 : index
    %87 = vector.load %arg10[%c136, %c0_59] : memref<392x352xf32, #tpu.memory_space<vmem>>, vector<8x352xf32>
    tpu.vector_store %arg10[%c136, %c0_59], %86 {strides = array<i32>} : memref<392x352xf32, #tpu.memory_space<vmem>>, vector<8x352xf32>,
    %c0_60 = arith.constant 0 : index
    %c48_61 = arith.constant 48 : index
    %88 = vector.load %arg9[%c0_60, %c48_61] : memref<8x506xf32, #tpu.memory_space<vmem>>, vector<8x352xf32>
    %c144 = arith.constant 144 : index
    %c0_62 = arith.constant 0 : index
    %89 = vector.load %arg10[%c144, %c0_62] : memref<392x352xf32, #tpu.memory_space<vmem>>, vector<8x352xf32>
    tpu.vector_store %arg10[%c144, %c0_62], %88 {strides = array<i32>} : memref<392x352xf32, #tpu.memory_space<vmem>>, vector<8x352xf32>,
    %c0_63 = arith.constant 0 : index
    %c49 = arith.constant 49 : index
    %90 = vector.load %arg9[%c0_63, %c49] : memref<8x506xf32, #tpu.memory_space<vmem>>, vector<8x352xf32>
    %c152 = arith.constant 152 : index
    %c0_64 = arith.constant 0 : index
    %91 = vector.load %arg10[%c152, %c0_64] : memref<392x352xf32, #tpu.memory_space<vmem>>, vector<8x352xf32>
    tpu.vector_store %arg10[%c152, %c0_64], %90 {strides = array<i32>} : memref<392x352xf32, #tpu.memory_space<vmem>>, vector<8x352xf32>,
    %c0_65 = arith.constant 0 : index
    %c50 = arith.constant 50 : index
    %92 = vector.load %arg9[%c0_65, %c50] : memref<8x506xf32, #tpu.memory_space<vmem>>, vector<8x352xf32>
    %c160 = arith.constant 160 : index
    %c0_66 = arith.constant 0 : index
    %93 = vector.load %arg10[%c160, %c0_66] : memref<392x352xf32, #tpu.memory_space<vmem>>, vector<8x352xf32>
    tpu.vector_store %arg10[%c160, %c0_66], %92 {strides = array<i32>} : memref<392x352xf32, #tpu.memory_space<vmem>>, vector<8x352xf32>,
    %c0_67 = arith.constant 0 : index
    %c66 = arith.constant 66 : index
    %94 = vector.load %arg9[%c0_67, %c66] : memref<8x506xf32, #tpu.memory_space<vmem>>, vector<8x352xf32>
    %c168 = arith.constant 168 : index
    %c0_68 = arith.constant 0 : index
    %95 = vector.load %arg10[%c168, %c0_68] : memref<392x352xf32, #tpu.memory_space<vmem>>, vector<8x352xf32>
    tpu.vector_store %arg10[%c168, %c0_68], %94 {strides = array<i32>} : memref<392x352xf32, #tpu.memory_space<vmem>>, vector<8x352xf32>,
    %c0_69 = arith.constant 0 : index
    %c67 = arith.constant 67 : index
    %96 = vector.load %arg9[%c0_69, %c67] : memref<8x506xf32, #tpu.memory_space<vmem>>, vector<8x352xf32>
    %c176 = arith.constant 176 : index
    %c0_70 = arith.constant 0 : index
    %97 = vector.load %arg10[%c176, %c0_70] : memref<392x352xf32, #tpu.memory_space<vmem>>, vector<8x352xf32>
    tpu.vector_store %arg10[%c176, %c0_70], %96 {strides = array<i32>} : memref<392x352xf32, #tpu.memory_space<vmem>>, vector<8x352xf32>,
    %c0_71 = arith.constant 0 : index
    %c68 = arith.constant 68 : index
    %98 = vector.load %arg9[%c0_71, %c68] : memref<8x506xf32, #tpu.memory_space<vmem>>, vector<8x352xf32>
    %c184 = arith.constant 184 : index
    %c0_72 = arith.constant 0 : index
    %99 = vector.load %arg10[%c184, %c0_72] : memref<392x352xf32, #tpu.memory_space<vmem>>, vector<8x352xf32>
    tpu.vector_store %arg10[%c184, %c0_72], %98 {strides = array<i32>} : memref<392x352xf32, #tpu.memory_space<vmem>>, vector<8x352xf32>,
    %c0_73 = arith.constant 0 : index
    %c69_74 = arith.constant 69 : index
    %100 = vector.load %arg9[%c0_73, %c69_74] : memref<8x506xf32, #tpu.memory_space<vmem>>, vector<8x352xf32>
    %c192 = arith.constant 192 : index
    %c0_75 = arith.constant 0 : index
    %101 = vector.load %arg10[%c192, %c0_75] : memref<392x352xf32, #tpu.memory_space<vmem>>, vector<8x352xf32>
    tpu.vector_store %arg10[%c192, %c0_75], %100 {strides = array<i32>} : memref<392x352xf32, #tpu.memory_space<vmem>>, vector<8x352xf32>,
    %c0_76 = arith.constant 0 : index
    %c70 = arith.constant 70 : index
    %102 = vector.load %arg9[%c0_76, %c70] : memref<8x506xf32, #tpu.memory_space<vmem>>, vector<8x352xf32>
    %c200 = arith.constant 200 : index
    %c0_77 = arith.constant 0 : index
    %103 = vector.load %arg10[%c200, %c0_77] : memref<392x352xf32, #tpu.memory_space<vmem>>, vector<8x352xf32>
    tpu.vector_store %arg10[%c200, %c0_77], %102 {strides = array<i32>} : memref<392x352xf32, #tpu.memory_space<vmem>>, vector<8x352xf32>,
    %c0_78 = arith.constant 0 : index
    %c71 = arith.constant 71 : index
    %104 = vector.load %arg9[%c0_78, %c71] : memref<8x506xf32, #tpu.memory_space<vmem>>, vector<8x352xf32>
    %c208 = arith.constant 208 : index
    %c0_79 = arith.constant 0 : index
    %105 = vector.load %arg10[%c208, %c0_79] : memref<392x352xf32, #tpu.memory_space<vmem>>, vector<8x352xf32>
    tpu.vector_store %arg10[%c208, %c0_79], %104 {strides = array<i32>} : memref<392x352xf32, #tpu.memory_space<vmem>>, vector<8x352xf32>,
    %c0_80 = arith.constant 0 : index
    %c72_81 = arith.constant 72 : index
    %106 = vector.load %arg9[%c0_80, %c72_81] : memref<8x506xf32, #tpu.memory_space<vmem>>, vector<8x352xf32>
    %c216 = arith.constant 216 : index
    %c0_82 = arith.constant 0 : index
    %107 = vector.load %arg10[%c216, %c0_82] : memref<392x352xf32, #tpu.memory_space<vmem>>, vector<8x352xf32>
    tpu.vector_store %arg10[%c216, %c0_82], %106 {strides = array<i32>} : memref<392x352xf32, #tpu.memory_space<vmem>>, vector<8x352xf32>,
    %c0_83 = arith.constant 0 : index
    %c88_84 = arith.constant 88 : index
    %108 = vector.load %arg9[%c0_83, %c88_84] : memref<8x506xf32, #tpu.memory_space<vmem>>, vector<8x352xf32>
    %c224 = arith.constant 224 : index
    %c0_85 = arith.constant 0 : index
    %109 = vector.load %arg10[%c224, %c0_85] : memref<392x352xf32, #tpu.memory_space<vmem>>, vector<8x352xf32>
    tpu.vector_store %arg10[%c224, %c0_85], %108 {strides = array<i32>} : memref<392x352xf32, #tpu.memory_space<vmem>>, vector<8x352xf32>,
    %c0_86 = arith.constant 0 : index
    %c89 = arith.constant 89 : index
    %110 = vector.load %arg9[%c0_86, %c89] : memref<8x506xf32, #tpu.memory_space<vmem>>, vector<8x352xf32>
    %c232 = arith.constant 232 : index
    %c0_87 = arith.constant 0 : index
    %111 = vector.load %arg10[%c232, %c0_87] : memref<392x352xf32, #tpu.memory_space<vmem>>, vector<8x352xf32>
    tpu.vector_store %arg10[%c232, %c0_87], %110 {strides = array<i32>} : memref<392x352xf32, #tpu.memory_space<vmem>>, vector<8x352xf32>,
    %c0_88 = arith.constant 0 : index
    %c90 = arith.constant 90 : index
    %112 = vector.load %arg9[%c0_88, %c90] : memref<8x506xf32, #tpu.memory_space<vmem>>, vector<8x352xf32>
    %c240 = arith.constant 240 : index
    %c0_89 = arith.constant 0 : index
    %113 = vector.load %arg10[%c240, %c0_89] : memref<392x352xf32, #tpu.memory_space<vmem>>, vector<8x352xf32>
    tpu.vector_store %arg10[%c240, %c0_89], %112 {strides = array<i32>} : memref<392x352xf32, #tpu.memory_space<vmem>>, vector<8x352xf32>,
    %c0_90 = arith.constant 0 : index
    %c91_91 = arith.constant 91 : index
    %114 = vector.load %arg9[%c0_90, %c91_91] : memref<8x506xf32, #tpu.memory_space<vmem>>, vector<8x352xf32>
    %c248 = arith.constant 248 : index
    %c0_92 = arith.constant 0 : index
    %115 = vector.load %arg10[%c248, %c0_92] : memref<392x352xf32, #tpu.memory_space<vmem>>, vector<8x352xf32>
    tpu.vector_store %arg10[%c248, %c0_92], %114 {strides = array<i32>} : memref<392x352xf32, #tpu.memory_space<vmem>>, vector<8x352xf32>,
    %c0_93 = arith.constant 0 : index
    %c92 = arith.constant 92 : index
    %116 = vector.load %arg9[%c0_93, %c92] : memref<8x506xf32, #tpu.memory_space<vmem>>, vector<8x352xf32>
    %c256 = arith.constant 256 : index
    %c0_94 = arith.constant 0 : index
    %117 = vector.load %arg10[%c256, %c0_94] : memref<392x352xf32, #tpu.memory_space<vmem>>, vector<8x352xf32>
    tpu.vector_store %arg10[%c256, %c0_94], %116 {strides = array<i32>} : memref<392x352xf32, #tpu.memory_space<vmem>>, vector<8x352xf32>,
    %c0_95 = arith.constant 0 : index
    %c93 = arith.constant 93 : index
    %118 = vector.load %arg9[%c0_95, %c93] : memref<8x506xf32, #tpu.memory_space<vmem>>, vector<8x352xf32>
    %c264 = arith.constant 264 : index
    %c0_96 = arith.constant 0 : index
    %119 = vector.load %arg10[%c264, %c0_96] : memref<392x352xf32, #tpu.memory_space<vmem>>, vector<8x352xf32>
    tpu.vector_store %arg10[%c264, %c0_96], %118 {strides = array<i32>} : memref<392x352xf32, #tpu.memory_space<vmem>>, vector<8x352xf32>,
    %c0_97 = arith.constant 0 : index
    %c94 = arith.constant 94 : index
    %120 = vector.load %arg9[%c0_97, %c94] : memref<8x506xf32, #tpu.memory_space<vmem>>, vector<8x352xf32>
    %c272 = arith.constant 272 : index
    %c0_98 = arith.constant 0 : index
    %121 = vector.load %arg10[%c272, %c0_98] : memref<392x352xf32, #tpu.memory_space<vmem>>, vector<8x352xf32>
    tpu.vector_store %arg10[%c272, %c0_98], %120 {strides = array<i32>} : memref<392x352xf32, #tpu.memory_space<vmem>>, vector<8x352xf32>,
    %c0_99 = arith.constant 0 : index
    %c110 = arith.constant 110 : index
    %122 = vector.load %arg9[%c0_99, %c110] : memref<8x506xf32, #tpu.memory_space<vmem>>, vector<8x352xf32>
    %c280 = arith.constant 280 : index
    %c0_100 = arith.constant 0 : index
    %123 = vector.load %arg10[%c280, %c0_100] : memref<392x352xf32, #tpu.memory_space<vmem>>, vector<8x352xf32>
    tpu.vector_store %arg10[%c280, %c0_100], %122 {strides = array<i32>} : memref<392x352xf32, #tpu.memory_space<vmem>>, vector<8x352xf32>,
    %c0_101 = arith.constant 0 : index
    %c111 = arith.constant 111 : index
    %124 = vector.load %arg9[%c0_101, %c111] : memref<8x506xf32, #tpu.memory_space<vmem>>, vector<8x352xf32>
    %c288 = arith.constant 288 : index
    %c0_102 = arith.constant 0 : index
    %125 = vector.load %arg10[%c288, %c0_102] : memref<392x352xf32, #tpu.memory_space<vmem>>, vector<8x352xf32>
    tpu.vector_store %arg10[%c288, %c0_102], %124 {strides = array<i32>} : memref<392x352xf32, #tpu.memory_space<vmem>>, vector<8x352xf32>,
    %c0_103 = arith.constant 0 : index
    %c112_104 = arith.constant 112 : index
    %126 = vector.load %arg9[%c0_103, %c112_104] : memref<8x506xf32, #tpu.memory_space<vmem>>, vector<8x352xf32>
    %c296 = arith.constant 296 : index
    %c0_105 = arith.constant 0 : index
    %127 = vector.load %arg10[%c296, %c0_105] : memref<392x352xf32, #tpu.memory_space<vmem>>, vector<8x352xf32>
    tpu.vector_store %arg10[%c296, %c0_105], %126 {strides = array<i32>} : memref<392x352xf32, #tpu.memory_space<vmem>>, vector<8x352xf32>,
    %c0_106 = arith.constant 0 : index
    %c113_107 = arith.constant 113 : index
    %128 = vector.load %arg9[%c0_106, %c113_107] : memref<8x506xf32, #tpu.memory_space<vmem>>, vector<8x352xf32>
    %c304 = arith.constant 304 : index
    %c0_108 = arith.constant 0 : index
    %129 = vector.load %arg10[%c304, %c0_108] : memref<392x352xf32, #tpu.memory_space<vmem>>, vector<8x352xf32>
    tpu.vector_store %arg10[%c304, %c0_108], %128 {strides = array<i32>} : memref<392x352xf32, #tpu.memory_space<vmem>>, vector<8x352xf32>,
    %c0_109 = arith.constant 0 : index
    %c114 = arith.constant 114 : index
    %130 = vector.load %arg9[%c0_109, %c114] : memref<8x506xf32, #tpu.memory_space<vmem>>, vector<8x352xf32>
    %c312 = arith.constant 312 : index
    %c0_110 = arith.constant 0 : index
    %131 = vector.load %arg10[%c312, %c0_110] : memref<392x352xf32, #tpu.memory_space<vmem>>, vector<8x352xf32>
    tpu.vector_store %arg10[%c312, %c0_110], %130 {strides = array<i32>} : memref<392x352xf32, #tpu.memory_space<vmem>>, vector<8x352xf32>,
    %c0_111 = arith.constant 0 : index
    %c115 = arith.constant 115 : index
    %132 = vector.load %arg9[%c0_111, %c115] : memref<8x506xf32, #tpu.memory_space<vmem>>, vector<8x352xf32>
    %c320 = arith.constant 320 : index
    %c0_112 = arith.constant 0 : index
    %133 = vector.load %arg10[%c320, %c0_112] : memref<392x352xf32, #tpu.memory_space<vmem>>, vector<8x352xf32>
    tpu.vector_store %arg10[%c320, %c0_112], %132 {strides = array<i32>} : memref<392x352xf32, #tpu.memory_space<vmem>>, vector<8x352xf32>,
    %c0_113 = arith.constant 0 : index
    %c116 = arith.constant 116 : index
    %134 = vector.load %arg9[%c0_113, %c116] : memref<8x506xf32, #tpu.memory_space<vmem>>, vector<8x352xf32>
    %c328 = arith.constant 328 : index
    %c0_114 = arith.constant 0 : index
    %135 = vector.load %arg10[%c328, %c0_114] : memref<392x352xf32, #tpu.memory_space<vmem>>, vector<8x352xf32>
    tpu.vector_store %arg10[%c328, %c0_114], %134 {strides = array<i32>} : memref<392x352xf32, #tpu.memory_space<vmem>>, vector<8x352xf32>,
    %c0_115 = arith.constant 0 : index
    %c132 = arith.constant 132 : index
    %136 = vector.load %arg9[%c0_115, %c132] : memref<8x506xf32, #tpu.memory_space<vmem>>, vector<8x352xf32>
    %c336 = arith.constant 336 : index
    %c0_116 = arith.constant 0 : index
    %137 = vector.load %arg10[%c336, %c0_116] : memref<392x352xf32, #tpu.memory_space<vmem>>, vector<8x352xf32>
    tpu.vector_store %arg10[%c336, %c0_116], %136 {strides = array<i32>} : memref<392x352xf32, #tpu.memory_space<vmem>>, vector<8x352xf32>,
    %c0_117 = arith.constant 0 : index
    %c133 = arith.constant 133 : index
    %138 = vector.load %arg9[%c0_117, %c133] : memref<8x506xf32, #tpu.memory_space<vmem>>, vector<8x352xf32>
    %c344 = arith.constant 344 : index
    %c0_118 = arith.constant 0 : index
    %139 = vector.load %arg10[%c344, %c0_118] : memref<392x352xf32, #tpu.memory_space<vmem>>, vector<8x352xf32>
    tpu.vector_store %arg10[%c344, %c0_118], %138 {strides = array<i32>} : memref<392x352xf32, #tpu.memory_space<vmem>>, vector<8x352xf32>,
    %c0_119 = arith.constant 0 : index
    %c134 = arith.constant 134 : index
    %140 = vector.load %arg9[%c0_119, %c134] : memref<8x506xf32, #tpu.memory_space<vmem>>, vector<8x352xf32>
    %c352 = arith.constant 352 : index
    %c0_120 = arith.constant 0 : index
    %141 = vector.load %arg10[%c352, %c0_120] : memref<392x352xf32, #tpu.memory_space<vmem>>, vector<8x352xf32>
    tpu.vector_store %arg10[%c352, %c0_120], %140 {strides = array<i32>} : memref<392x352xf32, #tpu.memory_space<vmem>>, vector<8x352xf32>,
    %c0_121 = arith.constant 0 : index
    %c135_122 = arith.constant 135 : index
    %142 = vector.load %arg9[%c0_121, %c135_122] : memref<8x506xf32, #tpu.memory_space<vmem>>, vector<8x352xf32>
    %c360 = arith.constant 360 : index
    %c0_123 = arith.constant 0 : index
    %143 = vector.load %arg10[%c360, %c0_123] : memref<392x352xf32, #tpu.memory_space<vmem>>, vector<8x352xf32>
    tpu.vector_store %arg10[%c360, %c0_123], %142 {strides = array<i32>} : memref<392x352xf32, #tpu.memory_space<vmem>>, vector<8x352xf32>,
    %c0_124 = arith.constant 0 : index
    %c136_125 = arith.constant 136 : index
    %144 = vector.load %arg9[%c0_124, %c136_125] : memref<8x506xf32, #tpu.memory_space<vmem>>, vector<8x352xf32>
    %c368 = arith.constant 368 : index
    %c0_126 = arith.constant 0 : index
    %145 = vector.load %arg10[%c368, %c0_126] : memref<392x352xf32, #tpu.memory_space<vmem>>, vector<8x352xf32>
    tpu.vector_store %arg10[%c368, %c0_126], %144 {strides = array<i32>} : memref<392x352xf32, #tpu.memory_space<vmem>>, vector<8x352xf32>,
    %c0_127 = arith.constant 0 : index
    %c137 = arith.constant 137 : index
    %146 = vector.load %arg9[%c0_127, %c137] : memref<8x506xf32, #tpu.memory_space<vmem>>, vector<8x352xf32>
    %c376 = arith.constant 376 : index
    %c0_128 = arith.constant 0 : index
    %147 = vector.load %arg10[%c376, %c0_128] : memref<392x352xf32, #tpu.memory_space<vmem>>, vector<8x352xf32>
    tpu.vector_store %arg10[%c376, %c0_128], %146 {strides = array<i32>} : memref<392x352xf32, #tpu.memory_space<vmem>>, vector<8x352xf32>,
    %c0_129 = arith.constant 0 : index
    %c138 = arith.constant 138 : index
    %148 = vector.load %arg9[%c0_129, %c138] : memref<8x506xf32, #tpu.memory_space<vmem>>, vector<8x352xf32>
    %c384 = arith.constant 384 : index
    %c0_130 = arith.constant 0 : index
    %149 = vector.load %arg10[%c384, %c0_130] : memref<392x352xf32, #tpu.memory_space<vmem>>, vector<8x352xf32>
    tpu.vector_store %arg10[%c384, %c0_130], %148 {strides = array<i32>} : memref<392x352xf32, #tpu.memory_space<vmem>>, vector<8x352xf32>,
    %c0_131 = arith.constant 0 : index
    %c0_132 = arith.constant 0 : index
    %150 = vector.load %arg10[%c0_131, %c0_132] : memref<392x352xf32, #tpu.memory_space<vmem>>, vector<392x352xf32>
    %c128_133 = arith.constant 128 : index
    %c0_134 = arith.constant 0 : index
    %151 = vector.load %arg10[%c128_133, %c0_134] : memref<392x352xf32, #tpu.memory_space<vmem>>, vector<24x352xf32>
    %c184_135 = arith.constant 184 : index
    %c0_136 = arith.constant 0 : index
    %152 = vector.load %arg10[%c184_135, %c0_136] : memref<392x352xf32, #tpu.memory_space<vmem>>, vector<24x352xf32>
    %c240_137 = arith.constant 240 : index
    %c0_138 = arith.constant 0 : index
    %153 = vector.load %arg10[%c240_137, %c0_138] : memref<392x352xf32, #tpu.memory_space<vmem>>, vector<24x352xf32>
    %154 = tpu.concatenate %151, %152, %153 in 0 : vector<24x352xf32>, vector<24x352xf32>, vector<24x352xf32> -> vector<72x352xf32>
    %c0_139 = arith.constant 0 : index
    %c0_140 = arith.constant 0 : index
    %155 = vector.load %arg6[%c0_139, %c0_140] : memref<8x392xf32, #tpu.memory_space<vmem>>, vector<8x392xf32>
    %cst_141 = arith.constant dense<0.000000e+00> : vector<8x352xf32>
    %156 = tpu.matmul %155, %150, %cst_141 {dimension_numbers = #tpu.dot_dimension_numbers<[1], [0], [0], [1], [0, 0, 1, 1], [], []>} : vector<8x392xf32>, vector<392x352xf32>, vector<8x352xf32> -> vector<8x352xf32>
    %c0_142 = arith.constant 0 : index
    %c0_143 = arith.constant 0 : index
    %157 = vector.load %arg7[%c0_142, %c0_143] : memref<8x1xf32, #tpu.memory_space<vmem>>, vector<8x1xf32>
    %158 = vector.broadcast %157 : vector<8x1xf32> to vector<8x352xf32>
    %159 = arith.addf %156, %158 : vector<8x352xf32>
    %cst_144 = arith.constant 0.000000e+00 : f32
    %160 = vector.broadcast %cst_144 : f32 to vector<8x352xf32>
    %161 = arith.maximumf %159, %160 : vector<8x352xf32>
    %c0_145 = arith.constant 0 : index
    %c0_146 = arith.constant 0 : index
    %162 = vector.load %arg2[%c0_145, %c0_146] : memref<8x72xf32, #tpu.memory_space<vmem>>, vector<8x72xf32>
    %cst_147 = arith.constant dense<0.000000e+00> : vector<8x352xf32>
    %163 = tpu.matmul %162, %154, %cst_147 {dimension_numbers = #tpu.dot_dimension_numbers<[1], [0], [0], [1], [0, 0, 1, 1], [], []>} : vector<8x72xf32>, vector<72x352xf32>, vector<8x352xf32> -> vector<8x352xf32>
    %c0_148 = arith.constant 0 : index
    %c0_149 = arith.constant 0 : index
    %164 = vector.load %arg3[%c0_148, %c0_149] : memref<8x1xf32, #tpu.memory_space<vmem>>, vector<8x1xf32>
    %165 = vector.broadcast %164 : vector<8x1xf32> to vector<8x352xf32>
    %166 = arith.addf %163, %165 : vector<8x352xf32>
    %cst_150 = arith.constant 0.000000e+00 : f32
    %167 = vector.broadcast %cst_150 : f32 to vector<8x352xf32>
    %168 = arith.maximumf %166, %167 : vector<8x352xf32>
    %c0_151 = arith.constant 0 : index
    %c0_152 = arith.constant 0 : index
    %169 = vector.load %arg4[%c0_151, %c0_152] : memref<8x8xf32, #tpu.memory_space<vmem>>, vector<8x8xf32>
    %cst_153 = arith.constant dense<0.000000e+00> : vector<8x352xf32>
    %170 = tpu.matmul %169, %168, %cst_153 {dimension_numbers = #tpu.dot_dimension_numbers<[1], [0], [0], [1], [0, 0, 1, 1], [], []>} : vector<8x8xf32>, vector<8x352xf32>, vector<8x352xf32> -> vector<8x352xf32>
    %c0_154 = arith.constant 0 : index
    %c0_155 = arith.constant 0 : index
    %171 = vector.load %arg5[%c0_154, %c0_155] : memref<8x1xf32, #tpu.memory_space<vmem>>, vector<8x1xf32>
    %172 = vector.broadcast %171 : vector<8x1xf32> to vector<8x352xf32>
    %173 = arith.addf %170, %172 : vector<8x352xf32>
    %174 = arith.negf %173 : vector<8x352xf32>
    %175 = math.exp %174 : vector<8x352xf32>
    %cst_156 = arith.constant 1.000000e+00 : f32
    %176 = vector.broadcast %cst_156 : f32 to vector<8x352xf32>
    %177 = arith.addf %176, %175 : vector<8x352xf32>
    %178 = arith.divf %176, %177 : vector<8x352xf32>
    %179 = arith.mulf %178, %161 : vector<8x352xf32>
    %c0_157 = arith.constant 0 : index
    %c0_158 = arith.constant 0 : index
    %c0_159 = arith.constant 0 : index
    %180 = vector.load %arg8[%c0_157, %c0_158, %c0_159] : memref<1x8x352xf32, #tpu.memory_space<vmem>>, vector<1x8x352xf32>
    %181 = vector.shape_cast %180 : vector<1x8x352xf32> to vector<8x352xf32>
    %182 = vector.shape_cast %179 : vector<8x352xf32> to vector<1x8x352xf32>
    tpu.vector_store %arg8[%c0_157, %c0_158, %c0_159], %182 {strides = array<i32>} : memref<1x8x352xf32, #tpu.memory_space<vmem>>, vector<1x8x352xf32>,
    return
  }
  func.func @transform_0(%arg0: i32) -> (i32, i32, i32, i32) {
    %c0_i32 = arith.constant 0 : i32
    %c0_i32_0 = arith.constant 0 : i32
    %c0_i32_1 = arith.constant 0 : i32
    %c0_i32_2 = arith.constant 0 : i32
    return %arg0, %c0_i32, %c0_i32_0, %c0_i32_1 : i32, i32, i32, i32
  }
  func.func @transform_1(%arg0: i32) -> (i32, i32) {
    %c0_i32 = arith.constant 0 : i32
    %c0_i32_0 = arith.constant 0 : i32
    %c0_i32_1 = arith.constant 0 : i32
    return %c0_i32, %c0_i32_0 : i32, i32
  }
  func.func @transform_2(%arg0: i32) -> (i32, i32) {
    %c0_i32 = arith.constant 0 : i32
    %c0_i32_0 = arith.constant 0 : i32
    %c0_i32_1 = arith.constant 0 : i32
    return %c0_i32, %c0_i32_0 : i32, i32
  }
  func.func @transform_3(%arg0: i32) -> (i32, i32) {
    %c0_i32 = arith.constant 0 : i32
    %c0_i32_0 = arith.constant 0 : i32
    %c0_i32_1 = arith.constant 0 : i32
    return %c0_i32, %c0_i32_0 : i32, i32
  }
  func.func @transform_4(%arg0: i32) -> (i32, i32) {
    %c0_i32 = arith.constant 0 : i32
    %c0_i32_0 = arith.constant 0 : i32
    %c0_i32_1 = arith.constant 0 : i32
    return %c0_i32, %c0_i32_0 : i32, i32
  }
  func.func @transform_5(%arg0: i32) -> (i32, i32) {
    %c0_i32 = arith.constant 0 : i32
    %c0_i32_0 = arith.constant 0 : i32
    %c0_i32_1 = arith.constant 0 : i32
    return %c0_i32, %c0_i32_0 : i32, i32
  }
  func.func @transform_6(%arg0: i32) -> (i32, i32) {
    %c0_i32 = arith.constant 0 : i32
    %c0_i32_0 = arith.constant 0 : i32
    %c0_i32_1 = arith.constant 0 : i32
    return %c0_i32, %c0_i32_0 : i32, i32
  }
  func.func @transform_7(%arg0: i32) -> (i32, i32, i32) {
    %c0_i32 = arith.constant 0 : i32
    %c0_i32_0 = arith.constant 0 : i32
    %c0_i32_1 = arith.constant 0 : i32
    return %arg0, %c0_i32, %c0_i32_0 : i32, i32, i32
  }
}

</mosaic_0001>

<bundles_post_ra>
// kernel: detail_enhancement.1
= control target key start
LH: loop header
LB: loop body
LE: loop exit
PB: predicated region body
PF: predicated region fallthrough
CT: control target
= control target key end

     0   :  { %s3091_s24 = smov 0   ;;  %s4274_s0 = inlined_call_operand.vmem [shape: f32[2,8,16,16], index: 0, kind: input, shape index: {}]   ;;  %s4275_s1 = inlined_call_operand.vmem [shape: f32[8,72], index: 1, kind: input, shape index: {}]   ;;  %s4276_s2 = inlined_call_operand.vmem [shape: f32[8,1], index: 2, kind: input, shape index: {}]   ;;  %s4277_s3 = inlined_call_operand.vmem [shape: f32[8,8], index: 3, kind: input, shape index: {}]   ;;  %s4278_s4 = inlined_call_operand.vmem [shape: f32[8,1], index: 4, kind: input, shape index: {}]   ;;  %s4279_s5 = inlined_call_operand.vmem [shape: f32[8,392], index: 5, kind: input, shape index: {}]   ;;  %s4280_s6 = inlined_call_operand.vmem [shape: f32[8,1], index: 6, kind: input, shape index: {}]   ;;  %s4281_s7 = inlined_call_operand.vmem [shape: f32[2,8,352], index: 7, kind: output, shape index: {}]  }
   0x1 LB: > { %s2615_s25 = sadd.s32 4294967295, %s2986_s24   ;;  %p2619_p0 = scmp.ge.s32.totalorder %s2986_s24, 1  ;;  %s2986_s24 = sphi %s3091_s24, %s17_s24  }
   0x2   : > { %p237_p1 = scmp.lt.s32.totalorder %s2986_s24, 3 }
   0x4   : > { %p238_p2 = pnand %p2619_p0, %p237_p1 }
   0x6   : > { %241 = sbr.rel (%p238_p2) target bundleno = 956 (0x3bc), region = 48 }
   0xd   : > { %p269_p3 = scmp.lt.s32.totalorder %s2615_s25, 1  ;;  %v4345_v0 = vmov 0.0   ;;  %vm309_vm0 = vcmask 1041409   ;;  %vm312_vm1 = vcmask 1042434   ;;  %vm315_vm2 = vcmask 1043459   ;;  %s2989_s30 = smov 117  }
   0xe   : > { %281 = vst [vmem:[#allocation2 + $0x10] sm:$0xff] %v4345_v0  ;;  %279 = vst [vmem:[#allocation2] sm:$0xff] %v4345_v0  ;;  %vm318_vm3 = vcmask 1044484   ;;  %vm321_vm4 = vcmask 1045509   ;;  %vm324_vm5 = vcmask 1046534   ;;  %vm327_vm6 = vcmask 1047559  }
   0xf   : > { %s4434_s25 = smov (!%p269_p3, %s2615_s25), 1  ;;  %280 = vst [vmem:[#allocation2 + $0x8] sm:$0xff] %v4345_v0  ;;  %s2990_s8 = smov 33   ;;  %vm282_vm7 = vcmask 998400   ;;  %vm496_vm8 = vcmask 39936   ;;  %vm515_vm9 = vcmask 220248  }
  0x10   : > { %s2634_s26 = sshll.u32 %s4434_s25, 7  ;;  %s2991_s9 = smov 11   ;;  %283 = vst.msk [vmem:[#allocation2 + $0x18] sm:$0xff] %vm282_vm7, %v4345_v0  ;;  %vm534_vm10 = vcmask 400648   ;;  %vm553_vm11 = vcmask 581048   ;;  %vm572_vm12 = vcmask 761448  }
  0x11   : > { %s3108_s29 = scalar_lea.vmem %s4274_s0, %s2634_s26  ;;  %s2992_s10 = smov 55   ;;  %vm591_vm13 = vcmask 941848   ;;  %vm610_vm14 = vcmask 1048520   ;;  %vm612_vm15 = vcmask 72704  }
  0x12   : > { %v3111_v1 = vld [vmem:[%s3108_s29 + $0x8] sm:$0xff]  ;;  %v3114_v2 = vld [vmem:[%s3108_s29 + $0x18] sm:$0xff]  ;;  %s2993_s11 = smov 77   ;;  %s2994_s12 = smov 99  }
  0x13   : > { %v3117_v3 = vld [vmem:[%s3108_s29 + $0x28] sm:$0xff]  ;;  %v3120_v4 = vld [vmem:[%s3108_s29 + $0x38] sm:$0xff]  ;;  %v477_v7 = vrot.slane %v3114_v2, 7  ;;  %v517_v9 = vrot.slane %v3111_v1, 2  ;;  %v518_v15 = vrot.slane %v3114_v2, 1  ;;  %v498_v30 = vrot.slane %v3111_v1, 1 }
  0x14   : > { %v3123_v5 = vld [vmem:[%s3108_s29 + $0x48] sm:$0xff]  ;;  %v3126_v6 = vld [vmem:[%s3108_s29 + $0x58] sm:$0xff]  ;;  %v479_v8 = vrot.slane %v3117_v3, 6  ;;  %v481_v12 = vrot.slane %v3120_v4, 5  ;;  %v521_v19 = vrot.slane %v3120_v4, 7  ;;  %v500_v31 = vrot.slane %v3117_v3, 7 }
  0x15   : > { %v3132_v10 = vld [vmem:[%s3108_s29 + $0x68] sm:$0xff]  ;;  %v3135_v11 = vld [vmem:[%s3108_s29 + $0x78] sm:$0xff]  ;;  %v483_v13 = vrot.slane %v3123_v5, 4  ;;  %v485_v14 = vrot.slane %v3126_v6, 3  ;;  %v478_v16 = vsel %vm309_vm0, %v477_v7, %v3111_v1  ;;  %v519_v21 = vsel %vm309_vm0, %v518_v15, %v517_v9  ;;  %s2995_s13 = smov 121   ;;  %s4322_s14 = smov 15  }
  0x16   : > { %v487_v17 = vrot.slane %v3132_v10, 2  ;;  %v489_v18 = vrot.slane %v3135_v11, 1  ;;  %v480_v20 = vsel %vm312_vm1, %v479_v8, %v478_v16  ;;  %v523_v22 = vrot.slane %v3123_v5, 6  ;;  %s2997_s15 = smov 113   ;;  %s2998_s16 = smov 29  }
  0x17   : > { %v525_v23 = vrot.slane %v3126_v6, 5  ;;  %v482_v24 = vsel %vm315_vm2, %v481_v12, %v480_v20  ;;  %v520_v25 = vsel %vm312_vm1, %v3117_v3, %v519_v21  ;;  %v527_v26 = vrot.slane %v3132_v10, 4  ;;  %s2999_s17 = smov 7   ;;  %s3000_s18 = smov 73  }
  0x18   : > { %v529_v27 = vrot.slane %v3135_v11, 3  ;;  %v484_v28 = vsel %vm318_vm3, %v483_v13, %v482_v24  ;;  %v522_v29 = vsel %vm315_vm2, %v521_v19, %v520_v25  ;;  %v502_v34 = vrot.slane %v3120_v4, 6  ;;  %s3001_s19 = smov 51   ;;  %s3002_s20 = smov 95  }
  0x19   : > { %v486_v32 = vsel %vm321_vm4, %v485_v14, %v484_v28  ;;  %v524_v33 = vsel %vm318_vm3, %v523_v22, %v522_v29  ;;  %v504_v35 = vrot.slane %v3123_v5, 5  ;;  %v499_v38 = vsel %vm309_vm0, %v3114_v2, %v498_v30  ;;  %s3003_s21 = smov 69   ;;  %s3004_s22 = smov 91  }
  0x1a   : > { %v488_v36 = vsel %vm324_vm5, %v487_v17, %v486_v32  ;;  %v526_v37 = vsel %vm321_vm4, %v525_v23, %v524_v33  ;;  %v506_v39 = vrot.slane %v3126_v6, 4  ;;  %v501_v42 = vsel %vm312_vm1, %v500_v31, %v499_v38  ;;  %s3005_s23 = smov 80   ;;  %s3006_s26 = smov 82  }
  0x1b   : > { %v490_v40 = vsel %vm327_vm6, %v489_v18, %v488_v36  ;;  %v528_v41 = vsel %vm324_vm5, %v527_v26, %v526_v37  ;;  %v508_v43 = vrot.slane %v3132_v10, 3  ;;  %v503_v45 = vsel %vm315_vm2, %v502_v34, %v501_v42  ;;  %s4288_s27 = smov 79   ;;  %s3008_s28 = smov 81  }
  0x1c   : > { %491 = vrot.lane.b32.xlu0 %v490_v40, %s2989_s30  ;;  %v530_v44 = vsel %vm327_vm6, %v529_v27, %v528_v41  ;;  %v510_v46 = vrot.slane %v3135_v11, 2  ;;  %v536_v47 = vrot.slane %v3111_v1, 3  ;;  %v505_v48 = vsel %vm318_vm3, %v504_v35, %v503_v45  ;;  %s4284_s30 = smov 62  }
  0x1d   : > { %531 = vrot.lane.b32.xlu1 %v530_v44, %s2990_s8  ;;  %v537_v49 = vrot.slane %v3114_v2, 2  ;;  %v539_v50 = vrot.slane %v3117_v3, 1  ;;  %v542_v51 = vrot.slane %v3123_v5, 7  ;;  %v507_v52 = vsel %vm321_vm4, %v506_v39, %v505_v48  ;;  %s4282_s8 = smov 61  }
  0x1e   : > { %v544_v53 = vrot.slane %v3126_v6, 6  ;;  %v546_v54 = vrot.slane %v3132_v10, 5  ;;  %v548_v55 = vrot.slane %v3135_v11, 4  ;;  %v509_v56 = vsel %vm324_vm5, %v508_v43, %v507_v52 }
  0x1f   : > { %v538_v57 = vsel %vm309_vm0, %v537_v49, %v536_v47  ;;  %v555_v58 = vrot.slane %v3111_v1, 4  ;;  %v556_v59 = vrot.slane %v3114_v2, 3  ;;  %v511_v60 = vsel %vm327_vm6, %v510_v46, %v509_v56  ;;  %v3236_v49 = vld [vmem:[%s3108_s29] sm:$0xff] }
  0x20   : > { %v540_v61 = vsel %vm312_vm1, %v539_v50, %v538_v57  ;;  %v558_v62 = vrot.slane %v3117_v3, 2  ;;  %v560_v63 = vrot.slane %v3120_v4, 1  ;;  %512 = vrot.lane.b32.xlu0 %v511_v60, %s2991_s9  ;;  %v563_v9 = vrot.slane %v3126_v6, 7  ;;  %v3239_v50 = vld [vmem:[%s3108_s29 + $0x10] sm:$0xff]  ;;  %v3264_v60 = vld [vmem:[%s3108_s29 + $0x60] sm:$0xff]  ;;  %s4290_s9 = smov 126  }
  0x21   : > { %v541_v7 = vsel %vm315_vm2, %v3120_v4, %v540_v61  ;;  %v557_v8 = vsel %vm309_vm0, %v556_v59, %v555_v58  ;;  %v565_v12 = vrot.slane %v3132_v10, 6  ;;  %v567_v15 = vrot.slane %v3135_v11, 5  ;;  %v3256_v58 = vld [vmem:[%s3108_s29 + $0x50] sm:$0xff]  ;;  %v3261_v59 = vld [vmem:[%s3108_s29 + $0x20] sm:$0xff] }
  0x22   : > { %v543_v13 = vsel %vm318_vm3, %v542_v51, %v541_v7  ;;  %v559_v14 = vsel %vm312_vm1, %v558_v62, %v557_v8  ;;  %v574_v16 = vrot.slane %v3111_v1, 5  ;;  %v575_v19 = vrot.slane %v3114_v2, 4  ;;  %v3267_v61 = vld [vmem:[%s3108_s29 + $0x70] sm:$0xff] }
  0x23   : > { %v545_v17 = vsel %vm321_vm4, %v544_v53, %v543_v13  ;;  %v561_v18 = vsel %vm315_vm2, %v560_v63, %v559_v14  ;;  %v577_v20 = vrot.slane %v3117_v3, 3  ;;  %v579_v23 = vrot.slane %v3120_v4, 2 }
  0x24   : > { %v547_v21 = vsel %vm324_vm5, %v546_v54, %v545_v17  ;;  %v562_v22 = vsel %vm318_vm3, %v3123_v5, %v561_v18  ;;  %v581_v24 = vrot.slane %v3123_v5, 1  ;;  %v576_v27 = vsel %vm309_vm0, %v575_v19, %v574_v16  ;;  %v3246_v54 = vld [vmem:[%s3108_s29 + $0x30] sm:$0xff] }
  0x25   : > { %v549_v25 = vsel %vm327_vm6, %v548_v55, %v547_v21  ;;  %v564_v26 = vsel %vm321_vm4, %v563_v9, %v562_v22  ;;  %v584_v28 = vrot.slane %v3132_v10, 7  ;;  %v578_v30 = vsel %vm312_vm1, %v577_v20, %v576_v27 }
  0x26   : > { %550 = vrot.lane.b32.xlu1 %v549_v25, %s2992_s10  ;;  %v566_v29 = vsel %vm324_vm5, %v565_v12, %v564_v26  ;;  %v586_v31 = vrot.slane %v3135_v11, 6  ;;  %v593_v32 = vrot.slane %v3111_v1, 6  ;;  %v580_v34 = vsel %vm315_vm2, %v579_v23, %v578_v30  ;;  %s3013_s10 = smov 60  }
  0x27   : > { %v568_v33 = vsel %vm327_vm6, %v567_v15, %v566_v29  ;;  %v594_v35 = vrot.slane %v3114_v2, 5  ;;  %v596_v36 = vrot.slane %v3117_v3, 4  ;;  %v582_v37 = vsel %vm318_vm3, %v581_v24, %v580_v34 }
  0x28   : > { %569 = vrot.lane.b32.xlu0 %v568_v33, %s2993_s11  ;;  %v598_v38 = vrot.slane %v3120_v4, 3  ;;  %v600_v39 = vrot.slane %v3123_v5, 2  ;;  %v602_v40 = vrot.slane %v3126_v6, 1  ;;  %v583_v41 = vsel %vm321_vm4, %v3126_v6, %v582_v37  ;;  %s3014_s11 = smov 59  }
  0x29   : > { %v595_v42 = vsel %vm309_vm0, %v594_v35, %v593_v32  ;;  %v605_v43 = vrot.slane %v3135_v11, 7  ;;  %v614_v44 = vrot.slane %v3111_v1, 7  ;;  %v585_v45 = vsel %vm324_vm5, %v584_v28, %v583_v41 }
  0x2a   : > { %v597_v46 = vsel %vm312_vm1, %v596_v36, %v595_v42  ;;  %v615_v47 = vrot.slane %v3114_v2, 6  ;;  %v617_v48 = vrot.slane %v3117_v3, 5  ;;  %v587_v51 = vsel %vm327_vm6, %v586_v31, %v585_v45  ;;  %v3249_v2 = vld [vmem:[%s3108_s29 + $0x40] sm:$0xff]  ;;  %s4286_s29 = smov 78  }
  0x2b   : > { %v599_v52 = vsel %vm315_vm2, %v598_v38, %v597_v46  ;;  %v619_v1 = vrot.slane %v3120_v4, 4  ;;  %v621_v53 = vrot.slane %v3123_v5, 3  ;;  %588 = vrot.lane.b32.xlu1 %v587_v51, %s2994_s12  ;;  %v623_v56 = vrot.slane %v3126_v6, 2  ;;  %s4298_s12 = smov 58  }
  0x2c   : > { %v601_v3 = vsel %vm318_vm3, %v600_v39, %v599_v52  ;;  %v616_v55 = vsel %vm309_vm0, %v615_v47, %v614_v44  ;;  %v625_v57 = vrot.slane %v3132_v10, 1  ;;  %v353_v62 = vrot.slane %v3236_v49, 2 }
  0x2d   : > { %v603_v4 = vsel %vm321_vm4, %v602_v40, %v601_v3  ;;  %v618_v5 = vsel %vm312_vm1, %v617_v48, %v616_v55  ;;  %v354_v63 = vrot.slane %v3239_v50, 1  ;;  %v357_v8 = vrot.slane %v3246_v54, 7 }
  0x2e   : > { %v604_v6 = vsel %vm324_vm5, %v3132_v10, %v603_v4  ;;  %v620_v7 = vsel %vm315_vm2, %v619_v1, %v618_v5  ;;  %v359_v9 = vrot.slane %v3249_v2, 6  ;;  %v361_v15 = vrot.slane %v3256_v58, 5 }
  0x2f   : > { %v606_v12 = vsel %vm327_vm6, %v605_v43, %v604_v6  ;;  %v622_v13 = vsel %vm318_vm3, %v621_v53, %v620_v7  ;;  %v355_v14 = vsel %vm309_vm0, %v354_v63, %v353_v62  ;;  %v363_v17 = vrot.slane %v3264_v60, 4 }
  0x30   : > { %607 = vrot.lane.b32.xlu0 %v606_v12, %s2995_s13  ;;  %v624_v16 = vsel %vm321_vm4, %v623_v56, %v622_v13  ;;  %v356_v10 = vsel %vm312_vm1, %v3261_v59, %v355_v14  ;;  %v365_v18 = vrot.slane %v3267_v61, 3  ;;  %v393_v21 = vrot.slane %v3236_v49, 4 }
  0x31   : > { %v626_v19 = vsel %vm324_vm5, %v625_v57, %v624_v16  ;;  %v358_v20 = vsel %vm315_vm2, %v357_v8, %v356_v10  ;;  %v394_v22 = vrot.slane %v3239_v50, 3  ;;  %v396_v25 = vrot.slane %v3261_v59, 2 }
  0x32   : > { %v627_v23 = vsel %vm327_vm6, %v3135_v11, %v626_v19  ;;  %v360_v24 = vsel %vm318_vm3, %v359_v9, %v358_v20  ;;  %v398_v26 = vrot.slane %v3246_v54, 1  ;;  %v401_v29 = vrot.slane %v3256_v58, 7 }
  0x33   : > { %628 = vrot.lane.b32.xlu1 %v627_v23, %s4322_s14  ;;  %v362_v27 = vsel %vm321_vm4, %v361_v15, %v360_v24  ;;  %v395_v28 = vsel %vm309_vm0, %v394_v22, %v393_v21  ;;  %v403_v30 = vrot.slane %v3264_v60, 6  ;;  %v405_v32 = vrot.slane %v3267_v61, 5 }
  0x34   : > { %v364_v31 = vsel %vm324_vm5, %v363_v17, %v362_v27  ;;  %v397_v11 = vsel %vm312_vm1, %v396_v25, %v395_v28  ;;  %v374_v33 = vrot.slane %v3236_v49, 3  ;;  %v375_v36 = vrot.slane %v3239_v50, 2 }
  0x35   : > { %v366_v34 = vsel %vm327_vm6, %v365_v18, %v364_v31  ;;  %v399_v35 = vsel %vm315_vm2, %v398_v26, %v397_v11  ;;  %v377_v37 = vrot.slane %v3261_v59, 1  ;;  %v380_v39 = vrot.slane %v3249_v2, 7 }
  0x36   : > { %367 = vrot.lane.b32.xlu0 %v366_v34, %s2997_s15  ;;  %v400_v38 = vsel %vm318_vm3, %v3249_v2, %v399_v35  ;;  %v382_v40 = vrot.slane %v3256_v58, 6  ;;  %v384_v41 = vrot.slane %v3264_v60, 5  ;;  %v376_v43 = vsel %vm309_vm0, %v375_v36, %v374_v33  ;;  %s3016_s15 = smov 124  }
  0x37   : > { %v402_v42 = vsel %vm321_vm4, %v401_v29, %v400_v38  ;;  %v386_v44 = vrot.slane %v3267_v61, 4  ;;  %v431_v45 = vrot.slane %v3236_v49, 6  ;;  %v378_v47 = vsel %vm312_vm1, %v377_v37, %v376_v43 }
  0x38   : > { %v404_v46 = vsel %vm324_vm5, %v403_v30, %v402_v42  ;;  %v432_v48 = vrot.slane %v3239_v50, 5  ;;  %v434_v51 = vrot.slane %v3261_v59, 4  ;;  %v379_v1 = vsel %vm315_vm2, %v3246_v54, %v378_v47 }
  0x39   : > { %v406_v52 = vsel %vm327_vm6, %v405_v32, %v404_v46  ;;  %v436_v53 = vrot.slane %v3246_v54, 3  ;;  %v438_v3 = vrot.slane %v3249_v2, 2  ;;  %v381_v55 = vsel %vm318_vm3, %v380_v39, %v379_v1 }
  0x3a   : > { %407 = vrot.lane.b32.xlu0 %v406_v52, %s2998_s16  ;;  %v433_v56 = vsel %vm309_vm0, %v432_v48, %v431_v45  ;;  %v440_v57 = vrot.slane %v3256_v58, 1  ;;  %v443_v4 = vrot.slane %v3267_v61, 7  ;;  %v383_v5 = vsel %vm321_vm4, %v382_v40, %v381_v55  ;;  %s4294_s16 = smov 57  }
  0x3b   : > { %v435_v62 = vsel %vm312_vm1, %v434_v51, %v433_v56  ;;  %v412_v63 = vrot.slane %v3236_v49, 5  ;;  %v413_v6 = vrot.slane %v3239_v50, 4  ;;  %v385_v7 = vsel %vm324_vm5, %v384_v41, %v383_v5 }
  0x3c   : > { %v437_v8 = vsel %vm315_vm2, %v436_v53, %v435_v62  ;;  %v415_v9 = vrot.slane %v3261_v59, 3  ;;  %v417_v12 = vrot.slane %v3246_v54, 2  ;;  %v387_v13 = vsel %vm327_vm6, %v386_v44, %v385_v7 }
  0x3d   : > { %v439_v14 = vsel %vm318_vm3, %v438_v3, %v437_v8  ;;  %v414_v15 = vsel %vm309_vm0, %v413_v6, %v412_v63  ;;  %v419_v16 = vrot.slane %v3249_v2, 1  ;;  %388 = vrot.lane.b32.xlu1 %v387_v13, %s2999_s17  ;;  %v422_v18 = vrot.slane %v3264_v60, 7  ;;  %s4296_s17 = smov 56  }
  0x3e   : > { %v441_v10 = vsel %vm321_vm4, %v440_v57, %v439_v14  ;;  %v416_v17 = vsel %vm312_vm1, %v415_v9, %v414_v15  ;;  %v424_v19 = vrot.slane %v3267_v61, 6  ;;  %v450_v22 = vrot.slane %v3236_v49, 7 }
  0x3f   : > { %v442_v20 = vsel %vm324_vm5, %v3264_v60, %v441_v10  ;;  %v418_v21 = vsel %vm315_vm2, %v417_v12, %v416_v17  ;;  %v451_v23 = vrot.slane %v3239_v50, 6  ;;  %v453_v26 = vrot.slane %v3261_v59, 5 }
  0x40   : > { %v444_v24 = vsel %vm327_vm6, %v443_v4, %v442_v20  ;;  %v420_v25 = vsel %vm318_vm3, %v419_v16, %v418_v21  ;;  %v455_v27 = vrot.slane %v3246_v54, 4  ;;  %v457_v30 = vrot.slane %v3249_v2, 3 }
  0x41   : > { %445 = vrot.lane.b32.xlu0 %v444_v24, %s3000_s18  ;;  %v421_v28 = vsel %vm321_vm4, %v3256_v58, %v420_v25  ;;  %v452_v29 = vsel %vm309_vm0, %v451_v23, %v450_v22  ;;  %v459_v31 = vrot.slane %v3256_v58, 2  ;;  %v461_v33 = vrot.slane %v3264_v60, 1  ;;  %s4302_s18 = smov 40  }
  0x42   : > { %v423_v11 = vsel %vm324_vm5, %v422_v18, %v421_v28  ;;  %v454_v32 = vsel %vm312_vm1, %v453_v26, %v452_v29  ;;  %v308_v34 = vrot.slane %v3239_v50, 7  ;;  %v311_v37 = vrot.slane %v3261_v59, 6  ;;  %v1932_v28 = vld [vmem:[%s4279_s5 + $0x8] sm:$0xff] }
  0x43   : > { %v425_v35 = vsel %vm327_vm6, %v424_v19, %v423_v11  ;;  %v456_v36 = vsel %vm315_vm2, %v455_v27, %v454_v32  ;;  %v314_v38 = vrot.slane %v3246_v54, 5  ;;  %v317_v41 = vrot.slane %v3249_v2, 4  ;;  %2151 = vmatprep.mubr.f32.mxu1 %v1932_v28  ;;  %2009 = vmatprep.mubr.f32.mxu0 %v1932_v28 }
  0x44   : > { %426 = vrot.lane.b32.xlu1 %v425_v35, %s3001_s19  ;;  %v458_v39 = vsel %vm318_vm3, %v457_v30, %v456_v36  ;;  %v310_v40 = vsel %vm309_vm0, %v308_v34, %v3236_v49  ;;  %v320_v42 = vrot.slane %v3256_v58, 3  ;;  %v323_v45 = vrot.slane %v3264_v60, 2  ;;  %s3020_s19 = smov 122  }
  0x45   : > { %v460_v43 = vsel %vm321_vm4, %v459_v31, %v458_v39  ;;  %v313_v44 = vsel %vm312_vm1, %v311_v37, %v310_v40  ;;  %v326_v48 = vrot.slane %v3267_v61, 1  ;;  %v334_v1 = vrot.slane %v3236_v49, 1 }
  0x46   : > { %v462_v46 = vsel %vm324_vm5, %v461_v33, %v460_v43  ;;  %v316_v47 = vsel %vm315_vm2, %v314_v38, %v313_v44  ;;  %v336_v53 = vrot.slane %v3261_v59, 7  ;;  %v338_v55 = vrot.slane %v3246_v54, 6 }
  0x47   : > { %v463_v51 = vsel %vm327_vm6, %v3267_v61, %v462_v46  ;;  %v319_v52 = vsel %vm318_vm3, %v317_v41, %v316_v47  ;;  %v340_v56 = vrot.slane %v3249_v2, 5  ;;  %v335_v4 = vsel %vm309_vm0, %v3239_v50, %v334_v1 }
  0x48   : > { %464 = vrot.lane.b32.xlu0 %v463_v51, %s3002_s20  ;;  %v322_v3 = vsel %vm321_vm4, %v320_v42, %v319_v52  ;;  %v342_v5 = vrot.slane %v3256_v58, 4  ;;  %v337_v49 = vsel %vm312_vm1, %v336_v53, %v335_v4  ;;  %v344_v59 = vrot.slane %v3264_v60, 3  ;;  %s4300_s20 = smov 39  }
  0x49   : > { %v325_v57 = vsel %vm324_vm5, %v323_v45, %v322_v3  ;;  %v339_v63 = vsel %vm315_vm2, %v338_v55, %v337_v49  ;;  %v346_v54 = vrot.slane %v3267_v61, 2  ;;  %vm631_vm0 = vcmask 253048  }
  0x4a   : > { %v328_v62 = vsel %vm327_vm6, %v326_v48, %v325_v57  ;;  %v341_v2 = vsel %vm318_vm3, %v340_v56, %v339_v63  ;;  %vm372_vm1 = vcmask 7168   ;;  %vm638_vm2 = vcmask 785408  }
  0x4b   : > { %329 = vrot.lane.b32.xlu1 %v328_v62, %s3003_s21  ;;  %v343_v50 = vsel %vm321_vm4, %v342_v5, %v341_v2  ;;  %vm391_vm3 = vcmask 187448   ;;  %vm410_vm4 = vcmask 367848   ;;  %s3022_s21 = smov 38  }
  0x4c   : > { %v345_v58 = vsel %vm324_vm5, %v344_v59, %v343_v50  ;;  %vm429_vm5 = vcmask 548248  }
  0x4d   : > { %v347_v6 = vsel %vm327_vm6, %v346_v54, %v345_v58  ;;  %vm448_vm6 = vcmask 728648  }
  0x4f   : > { %348 = vrot.lane.b32.xlu1 %v347_v6, %s3004_s22  ;;  %s3023_s22 = smov 37  }
  0x8e   : > { %v3402_v60 = vpop.permute.xlu0 %491 }
  0x8f   : > { %497 = vst.msk [vmem:[#allocation2 + $0x10] sm:$0xff] %vm496_vm8, %v3402_v60  ;;  %v532_v61 = vpop.permute.xlu1 %531  ;;  %vm467_vm8 = vcmask 909048  }
  0x92   : > { %v513_v7 = vpop.permute.xlu0 %512 }
  0x93   : > { %516 = vst.msk [vmem:[#allocation2 + $0x10] sm:$0xff] %vm515_vm9, %v513_v7  ;;  %vm494_vm9 = vcmask 1048488  }
  0x94   : > { %535 = vst.msk [vmem:[#allocation2 + $0x10] sm:$0xff] %vm534_vm10, %v532_v61  ;;  %vm332_vm10 = vcmask 695848  }
  0x98   : > { %v551_v8 = vpop.permute.xlu1 %550 }
  0x99   : > { %554 = vst.msk [vmem:[#allocation2 + $0x10] sm:$0xff] %vm553_vm11, %v551_v8  ;;  %vm351_vm11 = vcmask 876248  }
  0x9a   : > { %v570_v9 = vpop.permute.xlu0 %569 }
  0x9b   : > { %573 = vst.msk [vmem:[#allocation2 + $0x10] sm:$0xff] %vm572_vm12, %v570_v9  ;;  %vm370_vm12 = vcmask 1048456  }
  0x9d   : > { %v589_v12 = vpop.permute.xlu1 %588 }
  0x9e   : > { %592 = vst.msk [vmem:[#allocation2 + $0x10] sm:$0xff] %vm591_vm13, %v589_v12  ;;  %vm1032_vm13 = vcmask 654336  }
  0xa2   : > { %v608_v13 = vpop.permute.xlu0 %607 }
  0xa3   : > { %611 = vst.msk [vmem:[#allocation2 + $0x10] sm:$0xff] %vm610_vm14, %v608_v13  ;;  %vm4343_vm14 = vcmask 646144  }
  0xa4   : > { %613 = vst.msk [vmem:[#allocation2 + $0x18] sm:$0xff] %vm612_vm15, %v608_v13  ;;  %vm4336_vm15 = vcmask 637952  }
  0xa5   : > { %v629_v14 = vpop.permute.xlu1 %628 }
  0xa6   : > { %632 = vst.msk [vmem:[#allocation2 + $0x18] sm:$0xff] %vm631_vm0, %v629_v14  ;;  %vm4335_vm0 = vcmask 506880  }
  0xa8   : > { %v368_v15 = vpop.permute.xlu0 %367 }
  0xa9   : > { %373 = vst.msk [vmem:[#allocation2 + $0x8] sm:$0xff] %vm372_vm1, %v368_v15  ;;  %vm4334_vm1 = vcmask 498688  }
  0xaa   : > { %v3405_v16 = vld [vmem:[#allocation2 + $0x10] sm:$0xff] }
  0xab   : > { %639 = vst.msk [vmem:[#allocation3 + $0x10] sm:$0xff] %vm638_vm2, %v3405_v16 }
  0xac   : > { %v408_v17 = vpop.permute.xlu0 %407 }
  0xad   : > { %v3409_v10 = vld [vmem:[#allocation2 + $0x18] sm:$0xff] }
  0xae   : > { %1030 = vrot.lane.b32.xlu0 %v3409_v10, %s3005_s23  ;;  %978 = vrot.lane.b32.xlu1 %v3409_v10, %s3006_s26 }
  0xaf   : > { %v389_v18 = vpop.permute.xlu1 %388 }
  0xb0   : > { %392 = vst.msk [vmem:[#allocation2 + $0x8] sm:$0xff] %vm391_vm3, %v389_v18  ;;  %vm1162_vm3 = vcmask 490496  }
  0xb1   : > { %411 = vst.msk [vmem:[#allocation2 + $0x8] sm:$0xff] %vm410_vm4, %v408_v17  ;;  %vm1188_vm4 = vcmask 482304  }
  0xb2   : > { %1056 = vrot.lane.b32.xlu0 %v3409_v10, %s4288_s27  ;;  %1004 = vrot.lane.b32.xlu1 %v3409_v10, %s3008_s28 }
  0xb3   : > { %v446_v19 = vpop.permute.xlu0 %445 }
  0xb6   : > { %v427_v20 = vpop.permute.xlu1 %426  ;;  %1082 = vrot.lane.b32.xlu0 %v3409_v10, %s4286_s29  ;;  %1028 = vrot.lane.b32.xlu1 %v3405_v16, %s3005_s23 }
  0xb7   : > { %430 = vst.msk [vmem:[#allocation2 + $0x8] sm:$0xff] %vm429_vm5, %v427_v20  ;;  %vm1214_vm5 = vcmask 474112  }
  0xb8   : > { %449 = vst.msk [vmem:[#allocation2 + $0x8] sm:$0xff] %vm448_vm6, %v446_v19  ;;  %vm4333_vm6 = vcmask 465920  }
  0xba   : > { %v465_v21 = vpop.permute.xlu0 %464  ;;  %1108 = vrot.lane.b32.xlu0 %v3409_v10, %s4284_s30  ;;  %1054 = vrot.lane.b32.xlu1 %v3405_v16, %s4288_s27  ;;  %s3027_s27 = smov 36  }
  0xbb   : > { %468 = vst.msk [vmem:[#allocation2 + $0x8] sm:$0xff] %vm467_vm8, %v465_v21  ;;  %vm4332_vm8 = vcmask 457728  }
  0xbc   : > { %495 = vst.msk [vmem:[#allocation2 + $0x8] sm:$0xff] %vm494_vm9, %v3402_v60  ;;  %vm4331_vm9 = vcmask 326656  }
  0xbd   : > { %v330_v22 = vpop.permute.xlu1 %329 }
  0xbe   : > { %1134 = vrot.lane.b32.xlu0 %v3409_v10, %s4282_s8  ;;  %671 = vrot.lane.b32.xlu1 %v3405_v16, %s4290_s9  ;;  %333 = vst.msk [vmem:[#allocation2] sm:$0xff] %vm332_vm10, %v330_v22  ;;  %s4306_s9 = smov 103   ;;  %vm4330_vm10 = vcmask 318464  }
  0xc1   : > { %v349_v23 = vpop.permute.xlu1 %348 }
  0xc2   : > { %1160 = vrot.lane.b32.xlu0 %v3409_v10, %s3013_s10  ;;  %1080 = vrot.lane.b32.xlu1 %v3405_v16, %s4286_s29  ;;  %352 = vst.msk [vmem:[#allocation2] sm:$0xff] %vm351_vm11, %v349_v23  ;;  %s4310_s29 = smov 83   ;;  %vm980_vm11 = vcmask 670720  }
  0xc3   : > { %v1589_v24 = vld [vmem:[#allocation2 + $0x8] sm:$0xff]  ;;  %371 = vst.msk [vmem:[#allocation2] sm:$0xff] %vm370_vm12, %v368_v15  ;;  %vm1344_vm12 = vcmask 310272  }
  0xc4   : > { %637 = vst [vmem:[#allocation3 + $0x8] sm:$0xff] %v1589_v24  ;;  %v3599_v51 = vld [vmem:[#allocation2 + $0x8] sm:$0xff] }
  0xc6   : > { %1186 = vrot.lane.b32.xlu0 %v3409_v10, %s3014_s11  ;;  %1106 = vrot.lane.b32.xlu1 %v3405_v16, %s4284_s30  ;;  %s4308_s30 = smov 84  }
  0xca   : > { %1212 = vrot.lane.b32.xlu0 %v3409_v10, %s4298_s12  ;;  %713 = vrot.lane.b32.xlu1 %v3405_v16, %s3016_s15  ;;  %v1588_v25 = vld [vmem:[#allocation2] sm:$0xff] }
  0xcb   : > { %636 = vst [vmem:[#allocation3] sm:$0xff] %v1588_v25  ;;  %v3610_v3 = vld [vmem:[#allocation2] sm:$0xff] }
  0xce   : > { %1238 = vrot.lane.b32.xlu0 %v3409_v10, %s4294_s16  ;;  %1132 = vrot.lane.b32.xlu1 %v3405_v16, %s4282_s8  ;;  %s4292_s8 = smov 105  }
  0xd2   : > { %1264 = vrot.lane.b32.xlu0 %v3409_v10, %s4296_s17  ;;  %1158 = vrot.lane.b32.xlu1 %v3405_v16, %s3013_s10 }
  0xd6   : > { %1290 = vrot.lane.b32.xlu0 %v3409_v10, %s4302_s18  ;;  %755 = vrot.lane.b32.xlu1 %v3405_v16, %s3020_s19 }
  0xda   : > { %1316 = vrot.lane.b32.xlu0 %v3409_v10, %s4300_s20  ;;  %1184 = vrot.lane.b32.xlu1 %v3405_v16, %s3014_s11 }
  0xde   : > { %1342 = vrot.lane.b32.xlu0 %v3409_v10, %s3022_s21  ;;  %1210 = vrot.lane.b32.xlu1 %v3405_v16, %s4298_s12  ;;  %s4304_s12 = smov 101  }
  0xe2   : > { %1368 = vrot.lane.b32.xlu0 %v3409_v10, %s3023_s22  ;;  %796 = vrot.lane.b32.xlu1 %v3405_v16, %s4292_s8  ;;  %s4318_s8 = smov 35  }
  0xe6   : > { %926 = vrot.lane.b32.xlu0 %v3409_v10, %s4308_s30  ;;  %1236 = vrot.lane.b32.xlu1 %v3405_v16, %s4294_s16  ;;  %s4316_s16 = smov 34  }
  0xea   : > { %952 = vrot.lane.b32.xlu0 %v3409_v10, %s4310_s29  ;;  %1262 = vrot.lane.b32.xlu1 %v3405_v16, %s4296_s17  ;;  %s4320_s17 = smov 18  }
  0xee   : > { %1394 = vrot.lane.b32.xlu0 %v3409_v10, %s3027_s27  ;;  %838 = vrot.lane.b32.xlu1 %v3405_v16, %s4306_s9  ;;  %s4314_s9 = smov 106  }
  0xf2   : > { %1420 = vrot.lane.b32.xlu0 %v3409_v10, %s4318_s8  ;;  %1288 = vrot.lane.b32.xlu1 %v3405_v16, %s4302_s18  ;;  %s4312_s18 = smov 125  }
  0xf6   : > { %1446 = vrot.lane.b32.xlu0 %v3409_v10, %s4316_s16  ;;  %1314 = vrot.lane.b32.xlu1 %v3405_v16, %s4300_s20  ;;  %s3033_s20 = smov 127  }
  0xfa   : > { %1472 = vrot.lane.b32.xlu0 %v3409_v10, %s4320_s17  ;;  %880 = vrot.lane.b32.xlu1 %v3405_v16, %s4304_s12  ;;  %s3035_s12 = smov 123  }
  0xfe   : > { %976 = vrot.lane.b32.xlu0 %v3405_v16, %s3006_s26  ;;  %1340 = vrot.lane.b32.xlu1 %v3405_v16, %s3022_s21 }
 0x102   : > { %1002 = vrot.lane.b32.xlu0 %v3405_v16, %s3008_s28  ;;  %1366 = vrot.lane.b32.xlu1 %v3405_v16, %s3023_s22 }
 0x106   : > { %650 = vrot.lane.b32.xlu0 %v3405_v16, %s3033_s20  ;;  %924 = vrot.lane.b32.xlu1 %v3405_v16, %s4308_s30  ;;  %s3037_s30 = smov 104  }
 0x10a   : > { %692 = vrot.lane.b32.xlu0 %v3405_v16, %s4312_s18  ;;  %950 = vrot.lane.b32.xlu1 %v3405_v16, %s4310_s29  ;;  %s3038_s29 = smov 102   ;;  %s3039_s18 = smov 100  }
 0x10e   : > { %734 = vrot.lane.b32.xlu0 %v3405_v16, %s3035_s12  ;;  %1392 = vrot.lane.b32.xlu1 %v3405_v16, %s3027_s27 }
 0x112   : > { %775 = vrot.lane.b32.xlu0 %v3405_v16, %s4314_s9  ;;  %1418 = vrot.lane.b32.xlu1 %v3405_v16, %s4318_s8  ;;  %s3040_s9 = smov 17   ;;  %s3042_s8 = smov 14  }
 0x116   : > { %817 = vrot.lane.b32.xlu0 %v3405_v16, %s3037_s30  ;;  %1444 = vrot.lane.b32.xlu1 %v3405_v16, %s4316_s16  ;;  %s3041_s16 = smov 16  }
 0x11a   : > { %859 = vrot.lane.b32.xlu0 %v3405_v16, %s3038_s29  ;;  %1470 = vrot.lane.b32.xlu1 %v3405_v16, %s4320_s17  ;;  %s4326_s17 = smov 13  }
 0x11e   : > { %901 = vrot.lane.b32.xlu0 %v3405_v16, %s3039_s18  ;;  %1496 = vrot.lane.b32.xlu1 %v3405_v16, %s3040_s9 }
 0x120   : > { %v1031_v26 = vpop.permute.xlu0 %1030  ;;  %v3528_v27 = vpop.permute.xlu1 %978 }
 0x122   : > { %1498 = vrot.lane.b32.xlu0 %v3409_v10, %s3040_s9  ;;  %1522 = vrot.lane.b32.xlu1 %v3405_v16, %s3041_s16 }
 0x124   : > { %v1057_v29 = vpop.permute.xlu0 %1056  ;;  %v3537_v30 = vpop.permute.xlu1 %1004 }
 0x126   : > { %1524 = vrot.lane.b32.xlu0 %v3409_v10, %s3041_s16  ;;  %1548 = vrot.lane.b32.xlu1 %v3405_v16, %s4322_s14 }
 0x128   : > { %v1083_v31 = vpop.permute.xlu0 %1082  ;;  %v3543_v11 = vpop.permute.xlu1 %1028 }
 0x129   : > { %v1035_v32 = vsel %vm1032_vm13, %v3543_v11, %v1031_v26 }
 0x12a   : > { %1041 = vst.msk [vmem:[#allocation3 + $0x1c0] sm:$0xff] %vm638_vm2, %v1035_v32  ;;  %1550 = vrot.lane.b32.xlu0 %v3409_v10, %s4322_s14  ;;  %1574 = vrot.lane.b32.xlu1 %v3405_v16, %s3042_s8  ;;  %s4324_s14 = smov 12  }
 0x12c   : > { %v1109_v33 = vpop.permute.xlu0 %1108  ;;  %v3552_v34 = vpop.permute.xlu1 %1054 }
 0x12d   : > { %v1061_v35 = vsel %vm4343_vm14, %v3552_v34, %v1057_v29  ;;  %vm1604_vm14 = vcmask 105472  }
 0x12e   : > { %1067 = vst.msk [vmem:[#allocation3 + $0x1d8] sm:$0xff] %vm638_vm2, %v1061_v35  ;;  %1576 = vrot.lane.b32.xlu0 %v3409_v10, %s3042_s8  ;;  %1600 = vrot.lane.b32.xlu1 %v3405_v16, %s4326_s17 }
 0x130   : > { %v1135_v36 = vpop.permute.xlu0 %1134  ;;  %v3561_v37 = vpop.permute.xlu1 %671 }
 0x131   : > { %681 = vst.msk [vmem:[#allocation3 + $0x40] sm:$0xff] %vm638_vm2, %v3561_v37  ;;  %v3629_v62 = vld [vmem:[#allocation3 + $0x1c0] sm:$0xff] }
 0x132   : > { %1602 = vrot.lane.b32.xlu0 %v3409_v10, %s4326_s17  ;;  %1626 = vrot.lane.b32.xlu1 %v3405_v16, %s4324_s14  ;;  %s4328_s17 = smov 119  }
 0x134   : > { %v1161_v38 = vpop.permute.xlu0 %1160  ;;  %v3569_v39 = vpop.permute.xlu1 %1080 }
 0x135   : > { %v1087_v40 = vsel %vm4336_vm15, %v3569_v39, %v1083_v31  ;;  %vm4339_vm15 = vcmask 277504  }
 0x136   : > { %1093 = vst.msk [vmem:[#allocation3 + $0x1f0] sm:$0xff] %vm638_vm2, %v1087_v40  ;;  %1628 = vrot.lane.b32.xlu0 %v3409_v10, %s4324_s14  ;;  %1650 = vrot.lane.b32.xlu1 %v3409_v10, %s3016_s15  ;;  %s3045_s14 = smov 120  }
 0x138   : > { %v1187_v41 = vpop.permute.xlu0 %1186  ;;  %v3578_v42 = vpop.permute.xlu1 %1106 }
 0x139   : > { %v1113_v43 = vsel %vm4335_vm0, %v3578_v42, %v1109_v33  ;;  %vm4337_vm0 = vcmask 285696  }
 0x13a   : > { %1119 = vst.msk [vmem:[#allocation3 + $0x208] sm:$0xff] %vm638_vm2, %v1113_v43  ;;  %1670 = vrot.lane.b32.xlu0 %v3409_v10, %s3035_s12  ;;  %1690 = vrot.lane.b32.xlu1 %v3409_v10, %s3020_s19 }
 0x13c   : > { %v1213_v44 = vpop.permute.xlu0 %1212  ;;  %v3587_v45 = vpop.permute.xlu1 %713 }
 0x13d   : > { %723 = vst.msk [vmem:[#allocation3 + $0x70] sm:$0xff] %vm638_vm2, %v3587_v45 }
 0x13e   : > { %1710 = vrot.lane.b32.xlu0 %v3409_v10, %s2995_s13  ;;  %1731 = vrot.lane.b32.xlu1 %v3409_v10, %s3045_s14 }
 0x140   : > { %v1239_v46 = vpop.permute.xlu0 %1238  ;;  %v3595_v47 = vpop.permute.xlu1 %1132 }
 0x141   : > { %v1139_v48 = vsel %vm4334_vm1, %v3595_v47, %v1135_v36  ;;  %vm1396_vm1 = vcmask 293888  }
 0x142   : > { %1145 = vst.msk [vmem:[#allocation3 + $0x220] sm:$0xff] %vm638_vm2, %v1139_v48  ;;  %1752 = vrot.lane.b32.xlu0 %v3409_v10, %s4328_s17  ;;  %974 = vrot.lane.b32.xlu1 %v3599_v51, %s3006_s26  ;;  %s3047_s17 = smov 118  }
 0x144   : > { %v1265_v52 = vpop.permute.xlu0 %1264  ;;  %v3606_v1 = vpop.permute.xlu1 %1158 }
 0x145   : > { %v1165_v53 = vsel %vm1162_vm3, %v3606_v1, %v1161_v38 }
 0x146   : > { %1171 = vst.msk [vmem:[#allocation3 + $0x238] sm:$0xff] %vm638_vm2, %v1165_v53  ;;  %1000 = vrot.lane.b32.xlu0 %v3599_v51, %s3008_s28  ;;  %972 = vrot.lane.b32.xlu1 %v3610_v3, %s3006_s26  ;;  %s4358_s26 = smov 58  }
 0x148   : > { %v1291_v55 = vpop.permute.xlu0 %1290  ;;  %v3617_v56 = vpop.permute.xlu1 %755 }
 0x149   : > { %764 = vst.msk [vmem:[#allocation3 + $0xa0] sm:$0xff] %vm638_vm2, %v3617_v56 }
 0x14a   : > { %998 = vrot.lane.b32.xlu0 %v3610_v3, %s3008_s28  ;;  %1773 = vrot.lane.b32.xlu1 %v3409_v10, %s3047_s17  ;;  %s4361_s28 = smov 106  }
 0x14c   : > { %v1317_v57 = vpop.permute.xlu0 %1316  ;;  %v3625_v4 = vpop.permute.xlu1 %1184 }
 0x14d   : > { %v1191_v5 = vsel %vm1188_vm4, %v3625_v4, %v1187_v41  ;;  %v3631_v49 = vld [vmem:[#allocation3 + $0x238] sm:$0xff] }
 0x14e   : > { %1197 = vst.msk [vmem:[#allocation3 + $0x250] sm:$0xff] %vm638_vm2, %v1191_v5  ;;  %1026 = vrot.lane.b32.xlu0 %v3599_v51, %s3005_s23  ;;  %1156 = vrot.lane.b32.xlu1 %v3599_v51, %s3013_s10  ;;  %v1843_v41 = vld [vmem:[#allocation3 + $0x1d8] sm:$0xff] }
 0x150   : > { %v1343_v63 = vpop.permute.xlu0 %1342  ;;  %v3640_v54 = vpop.permute.xlu1 %1210 }
 0x151   : > { %v1217_v2 = vsel %vm1214_vm5, %v3640_v54, %v1213_v44 }
 0x152   : > { %1223 = vst.msk [vmem:[#allocation3 + $0x268] sm:$0xff] %vm638_vm2, %v1217_v2  ;;  %1024 = vrot.lane.b32.xlu0 %v3610_v3, %s3005_s23  ;;  %1154 = vrot.lane.b32.xlu1 %v3610_v3, %s3013_s10  ;;  %s4359_s23 = smov 126   ;;  %v1792_v2 = vld [vmem:[#allocation3 + $0x40] sm:$0xff]  ;;  %s4362_s10 = smov 105  }
 0x154   : > { %v1369_v50 = vpop.permute.xlu0 %1368  ;;  %v3649_v58 = vpop.permute.xlu1 %796 }
 0x155   : > { %806 = vst.msk [vmem:[#allocation3 + $0xd0] sm:$0xff] %vm638_vm2, %v3649_v58 }
 0x156   : > { %1182 = vrot.lane.b32.xlu0 %v3599_v51, %s3014_s11  ;;  %1208 = vrot.lane.b32.xlu1 %v3599_v51, %s4358_s26 }
 0x158   : > { %v927_v6 = vpop.permute.xlu0 %926  ;;  %v3657_v60 = vpop.permute.xlu1 %1236 }
 0x159   : > { %v1243_v61 = vsel %vm4333_vm6, %v3657_v60, %v1239_v46  ;;  %vm954_vm6 = vcmask 678912   ;;  %v1786_v46 = vld [vmem:[#allocation3 + $0x10] sm:$0xff] }
 0x15a   : > { %1249 = vst.msk [vmem:[#allocation3 + $0x280] sm:$0xff] %vm638_vm2, %v1243_v61  ;;  %1180 = vrot.lane.b32.xlu0 %v3610_v3, %s3014_s11  ;;  %1206 = vrot.lane.b32.xlu1 %v3610_v3, %s4358_s26  ;;  %s4364_s11 = smov 101   ;;  %s4387_s26 = smov 34  }
 0x15c   : > { %v3666_v7 = vpop.permute.xlu0 %952  ;;  %v3668_v8 = vpop.permute.xlu1 %1262 }
 0x15d   : > { %v1269_v9 = vsel %vm4332_vm8, %v3668_v8, %v1265_v52  ;;  %vm928_vm8 = vcmask 687104  }
 0x15e   : > { %1275 = vst.msk [vmem:[#allocation3 + $0x298] sm:$0xff] %vm638_vm2, %v1269_v9  ;;  %1338 = vrot.lane.b32.xlu0 %v3599_v51, %s3022_s21  ;;  %1364 = vrot.lane.b32.xlu1 %v3599_v51, %s3023_s22 }
 0x160   : > { %v3677_v12 = vpop.permute.xlu0 %1394  ;;  %v3679_v13 = vpop.permute.xlu1 %838 }
 0x161   : > { %848 = vst.msk [vmem:[#allocation3 + $0x100] sm:$0xff] %vm638_vm2, %v3679_v13 }
 0x162   : > { %1336 = vrot.lane.b32.xlu0 %v3610_v3, %s3022_s21  ;;  %1362 = vrot.lane.b32.xlu1 %v3610_v3, %s3023_s22  ;;  %s4386_s22 = smov 35  }
 0x164   : > { %v3687_v14 = vpop.permute.xlu0 %1420  ;;  %v3689_v15 = vpop.permute.xlu1 %1288 }
 0x165   : > { %v1295_v16 = vsel %vm4331_vm9, %v3689_v15, %v1291_v55  ;;  %vm1370_vm9 = vcmask 302080   ;;  %v2808_v55 = vpack.c.bf16 %v1843_v41, %v3629_v62 }
 0x166   : > { %1301 = vst.msk [vmem:[#allocation3 + $0x2b0] sm:$0xff] %vm638_vm2, %v1295_v16  ;;  %1390 = vrot.lane.b32.xlu0 %v3599_v51, %s3027_s27  ;;  %1388 = vrot.lane.b32.xlu1 %v3610_v3, %s3027_s27  ;;  %s4360_s27 = smov 125  }
 0x168   : > { %v3698_v10 = vpop.permute.xlu0 %1446  ;;  %v3700_v17 = vpop.permute.xlu1 %1314 }
 0x169   : > { %v1321_v18 = vsel %vm4330_vm10, %v3700_v17, %v1317_v57  ;;  %vm1006_vm10 = vcmask 662528   ;;  %v1849_v57 = vld [vmem:[#allocation3 + $0x208] sm:$0xff] }
 0x16a   : > { %1327 = vst.msk [vmem:[#allocation3 + $0x2c8] sm:$0xff] %vm638_vm2, %v1321_v18  ;;  %648 = vrot.lane.b32.xlu0 %v3599_v51, %s3033_s20  ;;  %646 = vrot.lane.b32.xlu1 %v3610_v3, %s3033_s20 }
 0x16c   : > { %v3709_v19 = vpop.permute.xlu0 %1472  ;;  %v3711_v20 = vpop.permute.xlu1 %880 }
 0x16d   : > { %890 = vst.msk [vmem:[#allocation3 + $0x130] sm:$0xff] %vm638_vm2, %v3711_v20 }
 0x16e   : > { %669 = vrot.lane.b32.xlu0 %v3599_v51, %s4359_s23  ;;  %690 = vrot.lane.b32.xlu1 %v3599_v51, %s4360_s27 }
 0x170   : > { %v3719_v21 = vpop.permute.xlu0 %976  ;;  %v3721_v22 = vpop.permute.xlu1 %1340 }
 0x171   : > { %v983_v23 = vsel %vm980_vm11, %v3719_v21, %v3528_v27  ;;  %v1347_v24 = vsel %vm1344_vm12, %v3721_v22, %v1343_v63 }
 0x172   : > { %989 = vst.msk [vmem:[#allocation3 + $0x190] sm:$0xff] %vm638_vm2, %v983_v23  ;;  %1353 = vst.msk [vmem:[#allocation3 + $0x2e0] sm:$0xff] %vm638_vm2, %v1347_v24  ;;  %667 = vrot.lane.b32.xlu0 %v3610_v3, %s4359_s23  ;;  %688 = vrot.lane.b32.xlu1 %v3610_v3, %s4360_s27  ;;  %s4368_s23 = smov 79   ;;  %s4370_s27 = smov 78  }
 0x174   : > { %v3734_v25 = vpop.permute.xlu0 %1002  ;;  %v3736_v26 = vpop.permute.xlu1 %1366 }
 0x175   : > { %v1009_v27 = vsel %vm1006_vm10, %v3734_v25, %v3537_v30  ;;  %v1373_v28 = vsel %vm1370_vm9, %v3736_v26, %v1369_v50 }
 0x176   : > { %1015 = vst.msk [vmem:[#allocation3 + $0x1a8] sm:$0xff] %vm638_vm2, %v1009_v27  ;;  %1379 = vst.msk [vmem:[#allocation3 + $0x2f8] sm:$0xff] %vm638_vm2, %v1373_v28  ;;  %711 = vrot.lane.b32.xlu0 %v3599_v51, %s3016_s15  ;;  %732 = vrot.lane.b32.xlu1 %v3599_v51, %s3035_s12  ;;  %v1852_v28 = vld [vmem:[#allocation3 + $0x220] sm:$0xff] }
 0x178   : > { %v3749_v29 = vpop.permute.xlu0 %650  ;;  %v3751_v31 = vpop.permute.xlu1 %924 }
 0x179   : > { %660 = vst.msk [vmem:[#allocation3 + $0x28] sm:$0xff] %vm638_vm2, %v3749_v29  ;;  %v931_v30 = vsel %vm928_vm8, %v3751_v31, %v927_v6  ;;  %v1834_v36 = vld [vmem:[#allocation3 + $0x190] sm:$0xff] }
 0x17a   : > { %937 = vst.msk [vmem:[#allocation3 + $0x160] sm:$0xff] %vm638_vm2, %v931_v30  ;;  %709 = vrot.lane.b32.xlu0 %v3610_v3, %s3016_s15  ;;  %730 = vrot.lane.b32.xlu1 %v3610_v3, %s3035_s12  ;;  %v2816_v30 = vpack.c.bf16 %v3631_v49, %v1852_v28 }
 0x17c   : > { %v3762_v32 = vpop.permute.xlu0 %692  ;;  %v3764_v33 = vpop.permute.xlu1 %950 }
 0x17d   : > { %702 = vst.msk [vmem:[#allocation3 + $0x58] sm:$0xff] %vm638_vm2, %v3762_v32  ;;  %v957_v35 = vsel %vm954_vm6, %v3764_v33, %v3666_v7  ;;  %v1837_v38 = vld [vmem:[#allocation3 + $0x1a8] sm:$0xff]  ;;  %v1846_v7 = vld [vmem:[#allocation3 + $0x1f0] sm:$0xff] }
 0x17e   : > { %963 = vst.msk [vmem:[#allocation3 + $0x178] sm:$0xff] %vm638_vm2, %v957_v35  ;;  %753 = vrot.lane.b32.xlu0 %v3599_v51, %s3020_s19  ;;  %773 = vrot.lane.b32.xlu1 %v3599_v51, %s4361_s28  ;;  %v3776_v40 = vpack.c.bf16 %v1837_v38, %v1834_v36  ;;  %v2812_v9 = vpack.c.bf16 %v1849_v57, %v1846_v7  ;;  %v1861_v35 = vld [vmem:[#allocation3 + $0x268] sm:$0xff] }
 0x180   : > { %v3778_v43 = vpop.permute.xlu0 %734  ;;  %2805 = vmatprep.subr.bf16.mxu1 %v3776_v40  ;;  %v3781_v44 = vpop.permute.xlu1 %1392  ;;  %v1789_v48 = vld [vmem:[#allocation3 + $0x28] sm:$0xff] }
 0x181   : > { %744 = vst.msk [vmem:[#allocation3 + $0x88] sm:$0xff] %vm638_vm2, %v3778_v43  ;;  %v1399_v52 = vsel %vm1396_vm1, %v3781_v44, %v3677_v12  ;;  %v2806_v53 = vpack.c.bf16 %v1789_v48, %v1786_v46  ;;  %v3048_v12 = vmov 0  }
 0x182   : > { %1405 = vst.msk [vmem:[#allocation3 + $0x310] sm:$0xff] %vm638_vm2, %v1399_v52  ;;  %751 = vrot.lane.b32.xlu0 %v3610_v3, %s3020_s19  ;;  %771 = vrot.lane.b32.xlu1 %v3610_v3, %s4361_s28  ;;  %v1858_v52 = vld [vmem:[#allocation3 + $0x250] sm:$0xff]  ;;  %s4371_s28 = smov 62  }
 0x183   : > { %2807 = vmatpush3.bf16.msra.mxu1 %v2806_v53  ;;  %2965 = vset.pattern.permute.xlu1 %v3048_v12  ;;  %v3837_v53 = vpack.c.bf16 %v1861_v35, %v1858_v52 }
 0x184   : > { %v3794_v5 = vpop.permute.xlu0 %775  ;;  %2809 = vmatprep.subr.bf16.mxu1 %v2808_v55  ;;  %v3796_v63 = vpop.permute.xlu1 %1418  ;;  %v1795_v50 = vld [vmem:[#allocation3 + $0x58] sm:$0xff]  ;;  %2964 = vset.pattern.permute.xlu0 %v3048_v12 }
 0x185   : > { %785 = vst.msk [vmem:[#allocation3 + $0xb8] sm:$0xff] %vm638_vm2, %v3794_v5  ;;  %v1425_v6 = vsel %vm4337_vm0, %v3796_v63, %v3687_v14  ;;  %v2810_v61 = vpack.c.bf16 %v1795_v50, %v1792_v2  ;;  %v1798_v14 = vld [vmem:[#allocation3 + $0x70] sm:$0xff]  ;;  %vm4338_vm0 = vcmask 146432   ;;  %v1867_v55 = vld [vmem:[#allocation3 + $0x298] sm:$0xff] }
 0x186   : > { %1431 = vst.msk [vmem:[#allocation3 + $0x328] sm:$0xff] %vm638_vm2, %v1425_v6  ;;  %794 = vrot.lane.b32.xlu0 %v3599_v51, %s4362_s10  ;;  %815 = vrot.lane.b32.xlu1 %v3599_v51, %s3037_s30 }
 0x187   : > { %2811 = vmatpush3.bf16.msra.mxu1 %v2810_v61  ;;  %v1864_v61 = vld [vmem:[#allocation3 + $0x280] sm:$0xff] }
 0x188   : > { %v3808_v16 = vpop.permute.xlu0 %817  ;;  %2813 = vmatprep.subr.bf16.mxu1 %v2812_v9  ;;  %v3810_v18 = vpop.permute.xlu1 %1444  ;;  %v1801_v23 = vld [vmem:[#allocation3 + $0x88] sm:$0xff]  ;;  %v2824_v7 = vpack.c.bf16 %v1867_v55, %v1864_v61  ;;  %v1831_v61 = vld [vmem:[#allocation3 + $0x178] sm:$0xff] }
 0x189   : > { %827 = vst.msk [vmem:[#allocation3 + $0xe8] sm:$0xff] %vm638_vm2, %v3808_v16  ;;  %v1451_v24 = vsel %vm4339_vm15, %v3810_v18, %v3698_v10  ;;  %v2814_v27 = vpack.c.bf16 %v1801_v23, %v1798_v14  ;;  %v1804_v10 = vld [vmem:[#allocation3 + $0xa0] sm:$0xff]  ;;  %v1873_v9 = vld [vmem:[#allocation3 + $0x2c8] sm:$0xff]  ;;  %vm4341_vm15 = vcmask 130048  }
 0x18a   : > { %1457 = vst.msk [vmem:[#allocation3 + $0x340] sm:$0xff] %vm638_vm2, %v1451_v24  ;;  %792 = vrot.lane.b32.xlu0 %v3610_v3, %s4362_s10  ;;  %813 = vrot.lane.b32.xlu1 %v3610_v3, %s3037_s30  ;;  %s4363_s30 = smov 103   ;;  %v1816_v23 = vld [vmem:[#allocation3 + $0x100] sm:$0xff]  ;;  %s4376_s10 = smov 61  }
 0x18b   : > { %2815 = vmatpush3.bf16.msra.mxu1 %v2814_v27 }
 0x18c   : > { %v3823_v36 = vpop.permute.xlu0 %859  ;;  %2817 = vmatprep.subr.bf16.mxu1 %v2816_v30  ;;  %v3825_v38 = vpop.permute.xlu1 %1470  ;;  %v1807_v41 = vld [vmem:[#allocation3 + $0xb8] sm:$0xff]  ;;  %v1870_v30 = vld [vmem:[#allocation3 + $0x2b0] sm:$0xff] }
 0x18d   : > { %869 = vst.msk [vmem:[#allocation3 + $0x118] sm:$0xff] %vm638_vm2, %v3823_v36  ;;  %v1477_v46 = vsel %vm4338_vm0, %v3825_v38, %v3709_v19  ;;  %v2818_v48 = vpack.c.bf16 %v1807_v41, %v1804_v10  ;;  %v1810_v19 = vld [vmem:[#allocation3 + $0xd0] sm:$0xff]  ;;  %vm4340_vm0 = vcmask 138240   ;;  %v2828_v35 = vpack.c.bf16 %v1873_v9, %v1870_v30  ;;  %v1879_v10 = vld [vmem:[#allocation3 + $0x2f8] sm:$0xff] }
 0x18e   : > { %1483 = vst.msk [vmem:[#allocation3 + $0x358] sm:$0xff] %vm638_vm2, %v1477_v46  ;;  %836 = vrot.lane.b32.xlu0 %v3599_v51, %s4363_s30  ;;  %857 = vrot.lane.b32.xlu1 %v3599_v51, %s3038_s29 }
 0x18f   : > { %2819 = vmatpush3.bf16.msra.mxu1 %v2818_v48  ;;  %v1822_v48 = vld [vmem:[#allocation3 + $0x130] sm:$0xff] }
 0x190   : > { %v3839_v57 = vpop.permute.xlu0 %901  ;;  %2821 = vmatprep.subr.bf16.mxu1 %v3837_v53  ;;  %v3842_v2 = vpop.permute.xlu1 %1496  ;;  %v1813_v50 = vld [vmem:[#allocation3 + $0xe8] sm:$0xff] }
 0x191   : > { %911 = vst.msk [vmem:[#allocation3 + $0x148] sm:$0xff] %vm638_vm2, %v3839_v57  ;;  %v2822_v6 = vpack.c.bf16 %v1813_v50, %v1810_v19  ;;  %v1876_v50 = vld [vmem:[#allocation3 + $0x2e0] sm:$0xff] }
 0x192   : > { %834 = vrot.lane.b32.xlu0 %v3610_v3, %s4363_s30  ;;  %855 = vrot.lane.b32.xlu1 %v3610_v3, %s3038_s29  ;;  %s4365_s29 = smov 84   ;;  %s4379_s30 = smov 57  }
 0x193   : > { %2823 = vmatpush3.bf16.msra.mxu1 %v2822_v6  ;;  %v3868_v6 = vpack.c.bf16 %v1879_v10, %v1876_v50  ;;  %v3886_v10 = vld [vmem:[%s4279_s5] sm:$0xff] }
 0x194   : > { %v1499_v12 = vpop.permute.xlu0 %1498  ;;  %2825 = vmatprep.subr.bf16.mxu1 %v2824_v7  ;;  %v3850_v14 = vpop.permute.xlu1 %1522  ;;  %v1819_v24 = vld [vmem:[#allocation3 + $0x118] sm:$0xff] }
 0x195   : > { %v1503_v27 = vsel %vm4340_vm0, %v3842_v2, %v1499_v12  ;;  %v2826_v28 = vpack.c.bf16 %v1819_v24, %v1816_v23  ;;  %vm4342_vm0 = vcmask 121856   ;;  %v1828_v12 = vld [vmem:[#allocation3 + $0x160] sm:$0xff] }
 0x196   : > { %1509 = vst.msk [vmem:[#allocation3 + $0x370] sm:$0xff] %vm638_vm2, %v1503_v27  ;;  %878 = vrot.lane.b32.xlu0 %v3599_v51, %s4364_s11  ;;  %899 = vrot.lane.b32.xlu1 %v3599_v51, %s3039_s18  ;;  %v2834_v24 = vpack.c.bf16 %v1831_v61, %v1828_v12  ;;  %v1885_v27 = vld [vmem:[#allocation3 + $0x328] sm:$0xff]  ;;  %v1888_v12 = vld [vmem:[#allocation3 + $0x340] sm:$0xff] }
 0x197   : > { %2827 = vmatpush3.bf16.msra.mxu1 %v2826_v28 }
 0x198   : > { %v1525_v41 = vpop.permute.xlu0 %1524  ;;  %2829 = vmatprep.subr.bf16.mxu1 %v2828_v35  ;;  %v3859_v46 = vpop.permute.xlu1 %1548  ;;  %v1825_v52 = vld [vmem:[#allocation3 + $0x148] sm:$0xff]  ;;  %v4347_v35 = vmov 0.0|0.0  }
 0x199   : > { %v1529_v55 = vsel %vm4341_vm15, %v3850_v14, %v1525_v41  ;;  %v2830_v19 = vpack.c.bf16 %v1825_v52, %v1822_v48  ;;  %vm4344_vm15 = vcmask 113664   ;;  %v3890_v48 = vld [vmem:[#allocation3 + $0x310] sm:$0xff]  ;;  %v3895_v52 = vld [vmem:[%s4279_s5 + $0x18] sm:$0xff] }
 0x19a   : > { %1535 = vst.msk [vmem:[#allocation3 + $0x388] sm:$0xff] %vm638_vm2, %v1529_v55  ;;  %876 = vrot.lane.b32.xlu0 %v3610_v3, %s4364_s11  ;;  %897 = vrot.lane.b32.xlu1 %v3610_v3, %s3039_s18  ;;  %s4366_s18 = smov 83   ;;  %v2837_v55 = vpack.c.bf16 %v1885_v27, %v3890_v48  ;;  %s4380_s11 = smov 56  }
 0x19b   : > { %2831 = vmatpush3.bf16.msra.mxu1 %v2830_v19  ;;  %v1891_v19 = vld [vmem:[#allocation3 + $0x358] sm:$0xff] }
 0x19c   : > { %v1551_v7 = vpop.permute.xlu0 %1550  ;;  %2833 = vmatprep.subr.bf16.mxu1 %v3868_v6  ;;  %v3871_v9 = vpop.permute.xlu1 %1574 }
 0x19d   : > { %v1555_v23 = vsel %vm4342_vm0, %v3859_v46, %v1551_v7  ;;  %vm1941_vm0 = vcmask 64512  }
 0x19e   : > { %1561 = vst.msk [vmem:[#allocation3 + $0x3a0] sm:$0xff] %vm638_vm2, %v1555_v23  ;;  %922 = vrot.lane.b32.xlu0 %v3599_v51, %s4365_s29  ;;  %948 = vrot.lane.b32.xlu1 %v3599_v51, %s4366_s18  ;;  %v2840_v23 = vpack.c.bf16 %v1891_v19, %v1888_v12 }
 0x19f   : > { %2835 = vmatpush3.bf16.msra.mxu1 %v2834_v24 }
 0x1a0   : > { %v1577_v28 = vpop.permute.xlu0 %1576  ;;  %v3880_v30 = vpop.permute.xlu1 %1600  ;;  %2836 = vmatprep.subr.bf16.mxu1 %v4347_v35 }
 0x1a1   : > { %v1581_v41 = vsel %vm4344_vm15, %v3871_v9, %v1577_v28  ;;  %vm1630_vm15 = vcmask 97280   ;;  %v1897_v24 = vld [vmem:[#allocation3 + $0x388] sm:$0xff] }
 0x1a2   : > { %1587 = vst.msk [vmem:[#allocation3 + $0x3b8] sm:$0xff] %vm638_vm2, %v1581_v41  ;;  %920 = vrot.lane.b32.xlu0 %v3610_v3, %s4365_s29  ;;  %946 = vrot.lane.b32.xlu1 %v3610_v3, %s4366_s18  ;;  %s4382_s29 = smov 40   ;;  %s4383_s18 = smov 39  }
 0x1a3   : > { %2152 = vmatmul.mubr.f32.vlgmr.msra.gmra.mrb[0].mxu1 %v3886_v10 }
 0x1a4   : > { %2838 = vmatpush1.bf16.msra.mxu1 %v2837_v55  ;;  %v1603_v50 = vpop.permute.xlu0 %1602  ;;  %v3904_v61 = vpop.permute.xlu1 %1626  ;;  %2624 = vmatprep.mubr.msk.f32.mxu1 %vm1941_vm0, %v3895_v52  ;;  %v1894_v55 = vld [vmem:[#allocation3 + $0x370] sm:$0xff] }
 0x1a5   : > { %4367 = vst [vmem:[#allocation4_spill] sm:$0xff] %v3904_v61  ;;  %v1607_v7 = vsel %vm1604_vm14, %v3880_v30, %v1603_v50  ;;  %2839 = vmatprep.subr.bf16.mxu1 %v4347_v35  ;;  %v2843_v19 = vpack.c.bf16 %v1897_v24, %v1894_v55 }
 0x1a6   : > { %1613 = vst.msk [vmem:[#allocation3 + $0x3d0] sm:$0xff] %vm638_vm2, %v1607_v7  ;;  %1052 = vrot.lane.b32.xlu0 %v3599_v51, %s4368_s23  ;;  %1050 = vrot.lane.b32.xlu1 %v3610_v3, %s4368_s23  ;;  %s4388_s23 = smov 18  }
 0x1a8   : > { %2841 = vmatpush1.bf16.msra.mxu1 %v2840_v23  ;;  %v1629_v27 = vpop.permute.xlu0 %1628  ;;  %v3916_v28 = vpop.permute.xlu1 %1650  ;;  %v1900_v23 = vld [vmem:[#allocation3 + $0x3a0] sm:$0xff] }
 0x1a9   : > { %4369 = vst [vmem:[#allocation5_spill] sm:$0xff] %v3916_v28  ;;  %v1633_v41 = vsel %vm1630_vm15, %v3904_v61, %v1629_v27  ;;  %1659 = vst.msk [vmem:[#allocation3 + $0x400] sm:$0xff] %vm638_vm2, %v3916_v28  ;;  %2842 = vmatprep.subr.bf16.mxu1 %v4347_v35  ;;  %v1903_v50 = vld [vmem:[#allocation3 + $0x3b8] sm:$0xff] }
 0x1aa   : > { %1639 = vst.msk [vmem:[#allocation3 + $0x3e8] sm:$0xff] %vm638_vm2, %v1633_v41  ;;  %1078 = vrot.lane.b32.xlu0 %v3599_v51, %s4370_s27  ;;  %1104 = vrot.lane.b32.xlu1 %v3599_v51, %s4371_s28  ;;  %v2846_v24 = vpack.c.bf16 %v1903_v50, %v1900_v23 }
 0x1ac   : > { %2844 = vmatpush1.bf16.msra.mxu1 %v2843_v19  ;;  %v3928_v7 = vpop.permute.xlu0 %1670  ;;  %v3930_v12 = vpop.permute.xlu1 %1690 }
 0x1ad   : > { %4372 = vst [vmem:[#allocation6_spill] sm:$0xff] %v3928_v7  ;;  %4373 = vst [vmem:[#allocation7_spill] sm:$0xff] %v3930_v12  ;;  %2845 = vmatprep.subr.bf16.mxu1 %v4347_v35  ;;  %v1906_v55 = vld [vmem:[#allocation3 + $0x3d0] sm:$0xff] }
 0x1ae   : > { %1679 = vst.msk [vmem:[#allocation3 + $0x418] sm:$0xff] %vm638_vm2, %v3928_v7  ;;  %1699 = vst.msk [vmem:[#allocation3 + $0x430] sm:$0xff] %vm638_vm2, %v3930_v12  ;;  %1076 = vrot.lane.b32.xlu0 %v3610_v3, %s4370_s27  ;;  %1102 = vrot.lane.b32.xlu1 %v3610_v3, %s4371_s28  ;;  %s4389_s27 = smov 15   ;;  %s4391_s28 = smov 12  }
 0x1b0   : > { %2847 = vmatpush1.bf16.msra.mxu1 %v2846_v24  ;;  %v3941_v27 = vpop.permute.xlu0 %1710  ;;  %v3943_v41 = vpop.permute.xlu1 %1731  ;;  %v1912_v59 = vld [vmem:[#allocation3 + $0x400] sm:$0xff] }
 0x1b1   : > { %4374 = vst [vmem:[#allocation8_spill] sm:$0xff] %v3941_v27  ;;  %4375 = vst [vmem:[#allocation9_spill] sm:$0xff] %v3943_v41  ;;  %2848 = vmatprep.subr.bf16.mxu1 %v4347_v35  ;;  %v1909_v19 = vld [vmem:[#allocation3 + $0x3e8] sm:$0xff] }
 0x1b2   : > { %1720 = vst.msk [vmem:[#allocation3 + $0x448] sm:$0xff] %vm638_vm2, %v3941_v27  ;;  %1741 = vst.msk [vmem:[#allocation3 + $0x460] sm:$0xff] %vm638_vm2, %v3943_v41  ;;  %1130 = vrot.lane.b32.xlu0 %v3599_v51, %s4376_s10  ;;  %1128 = vrot.lane.b32.xlu1 %v3610_v3, %s4376_s10  ;;  %v2849_v50 = vpack.c.bf16 %v1909_v19, %v1906_v55  ;;  %v4378_v41 = vmov 0.0|0.0  }
 0x1b4   : > { %v3954_v23 = vpop.permute.xlu0 %1752  ;;  %2850 = vmatpush1.bf16.msra.mxu1 %v2849_v50  ;;  %v975_v24 = vpop.permute.xlu1 %974 }
 0x1b5   : > { %4377 = vst [vmem:[#allocation10_spill] sm:$0xff] %v3954_v23  ;;  %v1915_v0 = vld [vmem:[#allocation3 + $0x418] sm:$0xff]  ;;  %1762 = vst.msk [vmem:[#allocation3 + $0x478] sm:$0xff] %vm638_vm2, %v3954_v23  ;;  %v982_v35 = vsel %vm980_vm11, %v975_v24, %v3719_v21  ;;  %2851 = vmatprep.subr.bf16.mxu1 %v4378_v41  ;;  %v1918_v50 = vld [vmem:[#allocation3 + $0x430] sm:$0xff] }
 0x1b6   : > { %v2852_v27 = vpack.c.bf16 %v1915_v0, %v1912_v59  ;;  %1234 = vrot.lane.b32.xlu0 %v3599_v51, %s4379_s30  ;;  %1260 = vrot.lane.b32.xlu1 %v3599_v51, %s4380_s11 }
 0x1b8   : > { %v1001_v55 = vpop.permute.xlu0 %1000  ;;  %2853 = vmatpush1.bf16.msra.mxu1 %v2852_v27  ;;  %v973_v19 = vpop.permute.xlu1 %972 }
 0x1b9   : > { %v1921_v12 = vld [vmem:[#allocation3 + $0x448] sm:$0xff]  ;;  %v1008_v23 = vsel %vm1006_vm10, %v1001_v55, %v3734_v25  ;;  %v981_v7 = vsel %vm980_vm11, %v973_v19, %v975_v24  ;;  %2854 = vmatprep.subr.bf16.mxu1 %v4378_v41  ;;  %v1924_v27 = vld [vmem:[#allocation3 + $0x460] sm:$0xff]  ;;  %vm777_vm11 = vcmask 867328  }
 0x1ba   : > { %v2855_v21 = vpack.c.bf16 %v1921_v12, %v1918_v50  ;;  %1232 = vrot.lane.b32.xlu0 %v3610_v3, %s4379_s30  ;;  %1258 = vrot.lane.b32.xlu1 %v3610_v3, %s4380_s11  ;;  %v4384_v50 = vmov 0.0  }
 0x1bc   : > { %v999_v0 = vpop.permute.xlu0 %998  ;;  %2856 = vmatpush1.bf16.msra.mxu1 %v2855_v21  ;;  %v3973_v59 = vpop.permute.xlu1 %1773  ;;  %v1927_v28 = vld [vmem:[#allocation3 + $0x478] sm:$0xff] }
 0x1bd   : > { %4381 = vst [vmem:[#allocation11_spill] sm:$0xff] %v3973_v59  ;;  %v1007_v61 = vsel %vm1006_vm10, %v999_v0, %v1001_v55  ;;  %1783 = vst.msk [vmem:[#allocation3 + $0x490] sm:$0xff] %vm638_vm2, %v3973_v59  ;;  %2857 = vmatprep.subr.bf16.mxu1 %v4378_v41  ;;  %v2858_v25 = vpack.c.bf16 %v1927_v28, %v1924_v27  ;;  %vm736_vm10 = vcmask 1006592  }
 0x1be   : > { %1286 = vrot.lane.b32.xlu0 %v3599_v51, %s4382_s29  ;;  %1312 = vrot.lane.b32.xlu1 %v3599_v51, %s4383_s18  ;;  %v4013_v59 = vpack.c.bf16 %v1007_v61, %v981_v7 }
 0x1c0   : > { %v1027_v12 = vpop.permute.xlu0 %1026  ;;  %2859 = vmatpush1.bf16.msra.mxu1 %v2858_v25  ;;  %v1157_v24 = vpop.permute.xlu1 %1156  ;;  %v4007_v25 = vpack.c.bf16 %v1008_v23, %v982_v35 }
 0x1c1   : > { %v3985_v19 = vsel %vm1032_vm13, %v1027_v12, %v3543_v11  ;;  %v3989_v55 = vsel %vm1162_vm3, %v1157_v24, %v3606_v1  ;;  %2189 = vmatprep.subr.mxu1 %v4384_v50  ;;  %v3999_v11 = vld [vmem:[%s4279_s5 + $0x10] sm:$0xff] }
 0x1c2   : > { %1284 = vrot.lane.b32.xlu0 %v3610_v3, %s4382_s29  ;;  %1310 = vrot.lane.b32.xlu1 %v3610_v3, %s4383_s18  ;;  %4385 = vst [vmem:[#allocation12_spill] sm:$0xff] %v3999_v11  ;;  %s2892_s29 = smul.u32 24, %s4434_s25 }
 0x1c4   : > { %v1025_v28 = vpop.permute.xlu0 %1024  ;;  %v1155_v21 = vpop.permute.xlu1 %1154  ;;  %v1930_v0 = vld [vmem:[#allocation3 + $0x490] sm:$0xff]  ;;  %s278_s21 = scalar_lea.vmem %s4281_s7, %s2892_s29 }
 0x1c5   : > { %v4002_v27 = vsel %vm1032_vm13, %v1025_v28, %v1027_v12  ;;  %v4005_v1 = vsel %vm1162_vm3, %v1155_v21, %v1157_v24  ;;  %2190 = vmatpush1.msra.mxu1 %v1930_v0  ;;  %v2864_v12 = vpack.c.bf16 %v3989_v55, %v3985_v19  ;;  %vm652_vm13 = vcmask 1039360  }
 0x1c6   : > { %1416 = vrot.lane.b32.xlu0 %v3599_v51, %s4386_s22  ;;  %1414 = vrot.lane.b32.xlu1 %v3610_v3, %s4386_s22  ;;  %v2866_v7 = vpack.c.bf16 %v4005_v1, %v4002_v27  ;;  %vm2237_vm3 = vcmask 588800  }
 0x1c7   : > { %2222 = vmatmul.mubr.f32.vlgmr.msra.gmra.mrb[2].mxu1 %v3999_v11  ;;  %2861 = vmatprep.subr.bf16.mxu1 %v4007_v25 }
 0x1c8   : > { %v1183_v24 = vpop.permute.xlu0 %1182  ;;  %2863 = vmatpush1.bf16.msra.mxu1 %v4013_v59  ;;  %v1209_v35 = vpop.permute.xlu1 %1208  ;;  %2305 = vmatprep.mubr.f32.mxu1 %v4384_v50 }
 0x1c9   : > { %v1190_v23 = vsel %vm1188_vm4, %v1183_v24, %v3625_v4  ;;  %v1216_v61 = vsel %vm1214_vm5, %v1209_v35, %v3640_v54  ;;  %2865 = vmatprep.subr.bf16.mxu1 %v2864_v12 }
 0x1ca   : > { %1442 = vrot.lane.b32.xlu0 %v3599_v51, %s4387_s26  ;;  %1468 = vrot.lane.b32.xlu1 %v3599_v51, %s4388_s23  ;;  %v4031_v28 = vpack.c.bf16 %v1216_v61, %v1190_v23 }
 0x1cc   : > { %v1181_v21 = vpop.permute.xlu0 %1180  ;;  %v1207_v0 = vpop.permute.xlu1 %1206  ;;  %2867 = vmatpush1.bf16.msra.mxu1 %v2866_v7 }
 0x1cd   : > { %v1189_v4 = vsel %vm1188_vm4, %v1181_v21, %v1183_v24  ;;  %v1215_v11 = vsel %vm1214_vm5, %v1207_v0, %v1209_v35  ;;  %2869 = vmatprep.subr.bf16.mxu1 %v4031_v28  ;;  %vm694_vm4 = vcmask 1022976   ;;  %vm3050_vm5 = vmmov 0  }
 0x1ce   : > { %1440 = vrot.lane.b32.xlu0 %v3610_v3, %s4387_s26  ;;  %1466 = vrot.lane.b32.xlu1 %v3610_v3, %s4388_s23  ;;  %v4040_v54 = vpack.c.bf16 %v1215_v11, %v1189_v4 }
 0x1d0   : > { %v1339_v12 = vpop.permute.xlu0 %1338  ;;  %v1365_v23 = vpop.permute.xlu1 %1364  ;;  %2871 = vmatpush1.bf16.msra.mxu1 %v4040_v54 }
 0x1d1   : > { %v1346_v61 = vsel %vm1344_vm12, %v1339_v12, %v3721_v22  ;;  %v1372_v24 = vsel %vm1370_vm9, %v1365_v23, %v3736_v26 }
 0x1d2   : > { %1494 = vrot.lane.b32.xlu0 %v3599_v51, %s3040_s9  ;;  %1520 = vrot.lane.b32.xlu1 %v3599_v51, %s3041_s16  ;;  %v4051_v35 = vpack.c.bf16 %v1372_v24, %v1346_v61 }
 0x1d4   : > { %v1337_v11 = vpop.permute.xlu0 %1336  ;;  %v1363_v7 = vpop.permute.xlu1 %1362  ;;  %2873 = vmatprep.subr.bf16.mxu1 %v4051_v35 }
 0x1d5   : > { %v1345_v21 = vsel %vm1344_vm12, %v1337_v11, %v1339_v12  ;;  %v1371_v0 = vsel %vm1370_vm9, %v1363_v7, %v1365_v23  ;;  %v4077_v23 = vld [vmem:[%s4275_s1] sm:$0xff]  ;;  %vm715_vm9 = vcmask 1014784   ;;  %vm798_vm12 = vcmask 859136  }
 0x1d6   : > { %1492 = vrot.lane.b32.xlu0 %v3610_v3, %s3040_s9  ;;  %1518 = vrot.lane.b32.xlu1 %v3610_v3, %s3041_s16  ;;  %v4060_v22 = vpack.c.bf16 %v1371_v0, %v1345_v21  ;;  %v2979_v0 = vld [vmem:[#allocation3] sm:$0xff] }
 0x1d8   : > { %v1391_v26 = vpop.permute.xlu0 %1390  ;;  %v1389_v4 = vpop.permute.xlu1 %1388  ;;  %2875 = vmatpush1.bf16.msra.mxu1 %v4060_v22 }
 0x1d9   : > { %v4065_v61 = vsel %vm1396_vm1, %v1391_v26, %v3781_v44  ;;  %v4068_v12 = vsel %vm1396_vm1, %v1389_v4, %v1391_v26  ;;  %vm673_vm1 = vcmask 1031168  }
 0x1da   : > { %1546 = vrot.lane.b32.xlu0 %v3599_v51, %s4389_s27  ;;  %1572 = vrot.lane.b32.xlu1 %v3599_v51, %s3042_s8  ;;  %v4089_v51 = vld [vmem:[#allocation3 + $0x8] sm:$0xff] }
 0x1db   : > { %2257 = vmatprep.subr.mxu1 %v4065_v61 }
 0x1dc   : > { %v649_v44 = vpop.permute.xlu0 %648  ;;  %v647_v24 = vpop.permute.xlu1 %646  ;;  %2258 = vmatpush1.msra.mxu1 %v4068_v12 }
 0x1dd   : > { %v654_v11 = vsel %vm652_vm13, %v649_v44, %v3749_v29  ;;  %v653_v7 = vsel %vm652_vm13, %v647_v24, %v649_v44  ;;  %2625 = vmatmul.mubr.msk.f32.vlgmr.msra.gmra.mrb[4].mxu1 %vm2237_vm3, %v4077_v23  ;;  %2876 = vmatprep.subr.bf16.mxu1 %v4378_v41  ;;  %v4392_v24 = vpack.c.bf16 %v3631_v49, %v3629_v62  ;;  %vm819_vm13 = vcmask 850944  }
 0x1de   : > { %1544 = vrot.lane.b32.xlu0 %v3610_v3, %s4389_s27  ;;  %1570 = vrot.lane.b32.xlu1 %v3610_v3, %s3042_s8  ;;  %v2708_v21 = vpack.c.bf16 %v654_v11, %v4089_v51  ;;  %v2710_v29 = vpack.c.bf16 %v653_v7, %v2979_v0  ;;  %s4390_s8 = smov 13  }
 0x1df   : > { %2878 = vmatpush3.bf16.msra.mxu1 %v3776_v40  ;;  %2700 = vmatprep.mubr.msk.f32.mxu1 %vm3050_vm5, %v4384_v50 }
 0x1e0   : > { %v670_v26 = vpop.permute.xlu0 %669  ;;  %v691_v4 = vpop.permute.xlu1 %690  ;;  %2709 = vmatprep.subr.bf16.mxu0 %v2708_v21  ;;  %2879 = vmatprep.subr.bf16.mxu1 %v4378_v41 }
 0x1e1   : > { %v675_v3 = vsel %vm673_vm1, %v670_v26, %v3561_v37  ;;  %v696_v44 = vsel %vm694_vm4, %v691_v4, %v3762_v32  ;;  %2711 = vmatpush1.bf16.msra.mxu0 %v2710_v29 }
 0x1e2   : > { %1598 = vrot.lane.b32.xlu0 %v4089_v51, %s4390_s8  ;;  %1624 = vrot.lane.b32.xlu1 %v4089_v51, %s4391_s28  ;;  %v2712_v40 = vpack.c.bf16 %v696_v44, %v675_v3 }
 0x1e3   : > { %2881 = vmatpush3.bf16.msra.mxu1 %v4392_v24 }
 0x1e4   : > { %v668_v11 = vpop.permute.xlu0 %667  ;;  %v689_v7 = vpop.permute.xlu1 %688  ;;  %2713 = vmatprep.subr.bf16.mxu0 %v2712_v40  ;;  %2882 = vmatprep.subr.bf16.mxu1 %v4378_v41 }
 0x1e5   : > { %v674_v37 = vsel %vm673_vm1, %v668_v11, %v670_v26  ;;  %v695_v32 = vsel %vm694_vm4, %v689_v7, %v691_v4  ;;  %v1641_v4 = vld [vmem:[#allocation2 + $0x10] sm:$0xff]  ;;  %vm861_vm1 = vcmask 834560   ;;  %vm882_vm4 = vcmask 826368  }
 0x1e6   : > { %1596 = vrot.lane.b32.xlu0 %v2979_v0, %s4390_s8  ;;  %1622 = vrot.lane.b32.xlu1 %v2979_v0, %s4391_s28  ;;  %v2714_v21 = vpack.c.bf16 %v695_v32, %v674_v37 }
 0x1e7   : > { %2884 = vmatpush3.bf16.msra.mxu1 %v3837_v53 }
 0x1e8   : > { %v712_v62 = vpop.permute.xlu0 %711  ;;  %v733_v49 = vpop.permute.xlu1 %732  ;;  %2715 = vmatpush1.bf16.msra.mxu0 %v2714_v21  ;;  %2885 = vmatprep.subr.bf16.mxu1 %v4378_v41 }
 0x1e9   : > { %v717_v29 = vsel %vm715_vm9, %v712_v62, %v3587_v45  ;;  %v738_v26 = vsel %vm736_vm10, %v733_v49, %v3778_v43 }
 0x1ea   : > { %1648 = vrot.lane.b32.xlu0 %v1641_v4, %s3016_s15  ;;  %1668 = vrot.lane.b32.xlu1 %v1641_v4, %s3035_s12  ;;  %v2716_v0 = vpack.c.bf16 %v738_v26, %v717_v29 }
 0x1eb   : > { %2887 = vmatpush3.bf16.msra.mxu1 %v3868_v6 }
 0x1ec   : > { %v710_v53 = vpop.permute.xlu0 %709  ;;  %v731_v3 = vpop.permute.xlu1 %730  ;;  %2717 = vmatprep.subr.bf16.mxu0 %v2716_v0  ;;  %2698 = vmatprep.subr.mxu1 %v4384_v50 }
 0x1ed   : > { %v716_v41 = vsel %vm715_vm9, %v710_v53, %v712_v62  ;;  %v737_v45 = vsel %vm736_vm10, %v731_v3, %v733_v49 }
 0x1ee   : > { %1646 = vrot.lane.b32.xlu0 %v4089_v51, %s3016_s15  ;;  %1666 = vrot.lane.b32.xlu1 %v4089_v51, %s3035_s12  ;;  %v2718_v43 = vpack.c.bf16 %v737_v45, %v716_v41  ;;  %s4393_s12 = smov 119  }
 0x1ef   : > { %2699 = vmatpush3.msra.mxu1 %v3890_v48 }
 0x1f0   : > { %v754_v6 = vpop.permute.xlu0 %753  ;;  %v774_v44 = vpop.permute.xlu1 %773  ;;  %2701 = vmatmul.mubr.msk.f32.vlgmr.msra.gmra.mrb[6].mxu1 %vm2237_vm3, %v4077_v23  ;;  %2719 = vmatpush1.bf16.msra.mxu0 %v2718_v43  ;;  %vm840_vm3 = vcmask 842752  }
 0x1f1   : > { %v758_v40 = vsel %vm282_vm7, %v754_v6, %v3617_v56  ;;  %v779_v24 = vsel %vm777_vm11, %v774_v44, %v3794_v5 }
 0x1f2   : > { %1688 = vrot.lane.b32.xlu0 %v1641_v4, %s3020_s19  ;;  %1708 = vrot.lane.b32.xlu1 %v1641_v4, %s2995_s13  ;;  %v2720_v11 = vpack.c.bf16 %v779_v24, %v758_v40 }
 0x1f4   : > { %v752_v7 = vpop.permute.xlu0 %751  ;;  %v772_v37 = vpop.permute.xlu1 %771  ;;  %2721 = vmatprep.subr.bf16.mxu0 %v2720_v11 }
 0x1f5   : > { %v757_v48 = vsel %vm282_vm7, %v752_v7, %v754_v6  ;;  %v778_v32 = vsel %vm777_vm11, %v772_v37, %v774_v44  ;;  %v2386_v6 = vld [vmem:[%s4278_s4] sm:$0xff]  ;;  %vm903_vm11 = vcmask 818176  }
 0x1f6   : > { %1686 = vrot.lane.b32.xlu0 %v4089_v51, %s3020_s19  ;;  %1706 = vrot.lane.b32.xlu1 %v4089_v51, %s2995_s13  ;;  %v2722_v56 = vpack.c.bf16 %v778_v32, %v757_v48  ;;  %v2231_v44 = vld [vmem:[%s4276_s2] sm:$0xff] }
 0x1f8   : > { %v795_v5 = vpop.permute.xlu0 %794  ;;  %v816_v23 = vpop.permute.xlu1 %815  ;;  %2723 = vmatpush1.bf16.msra.mxu0 %v2722_v56 }
 0x1f9   : > { %v800_v21 = vsel %vm798_vm12, %v795_v5, %v3649_v58  ;;  %v821_v62 = vsel %vm819_vm13, %v816_v23, %v3808_v16 }
 0x1fa   : > { %1729 = vrot.lane.b32.xlu0 %v1641_v4, %s3045_s14  ;;  %1750 = vrot.lane.b32.xlu1 %v1641_v4, %s4393_s12  ;;  %v2724_v49 = vpack.c.bf16 %v821_v62, %v800_v21 }
 0x1fc   : > { %v793_v29 = vpop.permute.xlu0 %792  ;;  %v814_v26 = vpop.permute.xlu1 %813  ;;  %2725 = vmatprep.subr.bf16.mxu0 %v2724_v49 }
 0x1fd   : > { %v799_v0 = vsel %vm798_vm12, %v793_v29, %v795_v5  ;;  %v820_v53 = vsel %vm819_vm13, %v814_v26, %v816_v23  ;;  %vm4394_vm12 = vcmask 646144  }
 0x1fe   : > { %1727 = vrot.lane.b32.xlu0 %v4089_v51, %s3045_s14  ;;  %1748 = vrot.lane.b32.xlu1 %v4089_v51, %s4393_s12  ;;  %v2726_v58 = vpack.c.bf16 %v820_v53, %v799_v0  ;;  %vm4395_vm13 = vmmov %vm4394_vm12 }
 0x200   : > { %v837_v16 = vpop.permute.xlu0 %836  ;;  %v858_v3 = vpop.permute.xlu1 %857  ;;  %2727 = vmatpush1.bf16.msra.mxu0 %v2726_v58 }
 0x201   : > { %v842_v41 = vsel %vm840_vm3, %v837_v16, %v3679_v13  ;;  %v863_v45 = vsel %vm861_vm1, %v858_v3, %v3823_v36 }
 0x202   : > { %1771 = vrot.lane.b32.xlu0 %v1641_v4, %s3047_s17  ;;  %1769 = vrot.lane.b32.xlu1 %v4089_v51, %s3047_s17  ;;  %v2728_v43 = vpack.c.bf16 %v863_v45, %v842_v41  ;;  %v1935_v4 = vld [vmem:[%s4280_s6] sm:$0xff] }
 0x204   : > { %v835_v40 = vpop.permute.xlu0 %834  ;;  %v856_v24 = vpop.permute.xlu1 %855  ;;  %2729 = vmatprep.subr.bf16.mxu0 %v2728_v43 }
 0x205   : > { %v841_v13 = vsel %vm840_vm3, %v835_v40, %v837_v16  ;;  %v862_v36 = vsel %vm861_vm1, %v856_v24, %v858_v3 }
 0x206   : > { %2389 = vperm.xlu1 %2965, %v2386_v6   ;;  %v2730_v51 = vpack.c.bf16 %v862_v36, %v841_v13  ;;  %2234 = vperm.xlu0 %2964, %v2231_v44  }
 0x208   : > { %v879_v11 = vpop.permute.xlu0 %878  ;;  %v900_v7 = vpop.permute.xlu1 %899  ;;  %2731 = vmatpush1.bf16.msra.mxu0 %v2730_v51 }
 0x209   : > { %v884_v37 = vsel %vm882_vm4, %v879_v11, %v3711_v20  ;;  %v905_v48 = vsel %vm903_vm11, %v900_v7, %v3839_v57 }
 0x20a   : > { %1938 = vperm.xlu1 %2965, %v1935_v4   ;;  %v2732_v32 = vpack.c.bf16 %v905_v48, %v884_v37 }
 0x20c   : > { %v877_v56 = vpop.permute.xlu0 %876  ;;  %v898_v5 = vpop.permute.xlu1 %897  ;;  %2733 = vmatprep.subr.bf16.mxu0 %v2732_v32 }
 0x20d   : > { %v883_v23 = vsel %vm882_vm4, %v877_v56, %v879_v11  ;;  %v904_v21 = vsel %vm903_vm11, %v898_v5, %v900_v7  ;;  %vm4400_vm4 = vcmask 498688  }
 0x20e   : > { %v2734_v62 = vpack.c.bf16 %v904_v21, %v883_v23  ;;  %vm4401_vm11 = vmmov %vm4400_vm4 }
 0x210   : > { %v923_v49 = vpop.permute.xlu0 %922  ;;  %v949_v29 = vpop.permute.xlu1 %948  ;;  %2735 = vmatpush1.bf16.msra.mxu0 %v2734_v62 }
 0x211   : > { %v930_v26 = vsel %vm928_vm8, %v923_v49, %v3751_v31  ;;  %v956_v0 = vsel %vm954_vm6, %v949_v29, %v3764_v33 }
 0x212   : > { %v2736_v20 = vpack.c.bf16 %v956_v0, %v930_v26 }
 0x214   : > { %v921_v53 = vpop.permute.xlu0 %920  ;;  %v947_v57 = vpop.permute.xlu1 %946  ;;  %2737 = vmatprep.subr.bf16.mxu0 %v2736_v20 }
 0x215   : > { %v929_v58 = vsel %vm928_vm8, %v921_v53, %v923_v49  ;;  %v955_v16 = vsel %vm954_vm6, %v947_v57, %v949_v29  ;;  %vm4396_vm8 = vcmask 637952   ;;  %vm4397_vm6 = vcmask 506880  }
 0x216   : > { %v2738_v3 = vpack.c.bf16 %v955_v16, %v929_v58  ;;  %vm4398_vm3 = vmmov %vm4396_vm8 }
 0x217   : > { %vm4399_vm1 = vmmov %vm4397_vm6 }
 0x218   : > { %v1053_v41 = vpop.permute.xlu0 %1052  ;;  %v1051_v45 = vpop.permute.xlu1 %1050  ;;  %2739 = vmatpush1.bf16.msra.mxu0 %v2738_v3 }
 0x219   : > { %v1060_v43 = vsel %vm4394_vm12, %v1053_v41, %v3552_v34  ;;  %v1059_v31 = vsel %vm4395_vm13, %v1051_v45, %v1053_v41  ;;  %2741 = vmatprep.subr.bf16.mxu0 %v4007_v25  ;;  %vm4402_vm12 = vcmask 465920   ;;  %vm4403_vm13 = vcmask 457728  }
 0x21a   : > { %v2744_v33 = vpack.c.bf16 %v1060_v43, %v3985_v19  ;;  %v2746_v13 = vpack.c.bf16 %v1059_v31, %v4002_v27 }
 0x21c   : > { %v1079_v6 = vpop.permute.xlu0 %1078  ;;  %v1105_v44 = vpop.permute.xlu1 %1104  ;;  %2743 = vmatpush1.bf16.msra.mxu0 %v4013_v59 }
 0x21d   : > { %v1086_v40 = vsel %vm4396_vm8, %v1079_v6, %v3569_v39  ;;  %v1112_v24 = vsel %vm4397_vm6, %v1105_v44, %v3578_v42  ;;  %2745 = vmatprep.subr.bf16.mxu0 %v2744_v33  ;;  %vm4404_vm8 = vmmov %vm4402_vm12 }
 0x21e   : > { %v2748_v34 = vpack.c.bf16 %v1112_v24, %v1086_v40  ;;  %vm4405_vm6 = vmmov %vm4403_vm13 }
 0x220   : > { %v1077_v36 = vpop.permute.xlu0 %1076  ;;  %v1103_v51 = vpop.permute.xlu1 %1102  ;;  %2747 = vmatpush1.bf16.msra.mxu0 %v2746_v13 }
 0x221   : > { %v1085_v25 = vsel %vm4398_vm3, %v1077_v36, %v1079_v6  ;;  %v1111_v19 = vsel %vm4399_vm1, %v1103_v51, %v1105_v44  ;;  %2749 = vmatprep.subr.bf16.mxu0 %v2748_v34  ;;  %vm4406_vm3 = vcmask 326656   ;;  %vm4407_vm1 = vcmask 318464  }
 0x222   : > { %v2750_v4 = vpack.c.bf16 %v1111_v19, %v1085_v25 }
 0x224   : > { %v1131_v59 = vpop.permute.xlu0 %1130  ;;  %v1129_v11 = vpop.permute.xlu1 %1128  ;;  %2751 = vmatpush1.bf16.msra.mxu0 %v2750_v4 }
 0x225   : > { %v1138_v39 = vsel %vm4400_vm4, %v1131_v59, %v3595_v47  ;;  %v1137_v42 = vsel %vm4401_vm11, %v1129_v11, %v1131_v59  ;;  %vm4408_vm4 = vmmov %vm4406_vm3 }
 0x226   : > { %v2752_v27 = vpack.c.bf16 %v3989_v55, %v1138_v39  ;;  %v2754_v7 = vpack.c.bf16 %v4005_v1, %v1137_v42  ;;  %vm4409_vm11 = vmmov %vm4407_vm1 }
 0x228   : > { %v1235_v37 = vpop.permute.xlu0 %1234  ;;  %v1261_v48 = vpop.permute.xlu1 %1260  ;;  %2753 = vmatprep.subr.bf16.mxu0 %v2752_v27 }
 0x229   : > { %v1242_v32 = vsel %vm4402_vm12, %v1235_v37, %v3657_v60  ;;  %v1268_v56 = vsel %vm4403_vm13, %v1261_v48, %v3668_v8  ;;  %2755 = vmatpush1.bf16.msra.mxu0 %v2754_v7  ;;  %vm4410_vm12 = vcmask 285696   ;;  %v4424_v7 = vld [vmem:[#allocation4_spill] sm:$0xff] }
 0x22a   : > { %2757 = vmatprep.subr.bf16.mxu0 %v4031_v28  ;;  %v2760_v23 = vpack.c.bf16 %v1268_v56, %v1242_v32  ;;  %vm4411_vm13 = vmmov %vm4410_vm12 }
 0x22c   : > { %v1233_v5 = vpop.permute.xlu0 %1232  ;;  %v1259_v47 = vpop.permute.xlu1 %1258 }
 0x22d   : > { %v1241_v21 = vsel %vm4404_vm8, %v1233_v5, %v1235_v37  ;;  %v1267_v55 = vsel %vm4405_vm6, %v1259_v47, %v1261_v48  ;;  %2759 = vmatpush1.bf16.msra.mxu0 %v4040_v54  ;;  %vm4412_vm8 = vcmask 277504   ;;  %vm4413_vm6 = vcmask 146432  }
 0x22e   : > { %2761 = vmatprep.subr.bf16.mxu0 %v2760_v23  ;;  %v2762_v1 = vpack.c.bf16 %v1267_v55, %v1241_v21  ;;  %v4425_v21 = vld [vmem:[#allocation5_spill] sm:$0xff] }
 0x230   : > { %v1287_v62 = vpop.permute.xlu0 %1286  ;;  %v1313_v49 = vpop.permute.xlu1 %1312 }
 0x231   : > { %v1294_v60 = vsel %vm4406_vm3, %v1287_v62, %v3689_v15  ;;  %v1320_v8 = vsel %vm4407_vm1, %v1313_v49, %v3700_v17  ;;  %2763 = vmatpush1.bf16.msra.mxu0 %v2762_v1  ;;  %vm4414_vm3 = vmmov %vm4412_vm8  ;;  %v4426_v1 = vld [vmem:[#allocation6_spill] sm:$0xff] }
 0x232   : > { %v2764_v28 = vpack.c.bf16 %v1320_v8, %v1294_v60  ;;  %vm4415_vm1 = vmmov %vm4413_vm6 }
 0x234   : > { %v1285_v29 = vpop.permute.xlu0 %1284  ;;  %v1311_v26 = vpop.permute.xlu1 %1310  ;;  %2765 = vmatprep.subr.bf16.mxu0 %v2764_v28 }
 0x235   : > { %v1293_v0 = vsel %vm4408_vm4, %v1285_v29, %v1287_v62  ;;  %v1319_v20 = vsel %vm4409_vm11, %v1311_v26, %v1313_v49  ;;  %vm4416_vm4 = vcmask 138240   ;;  %vm4417_vm11 = vcmask 130048  }
 0x236   : > { %v2766_v54 = vpack.c.bf16 %v1319_v20, %v1293_v0  ;;  %v4427_v20 = vld [vmem:[#allocation7_spill] sm:$0xff] }
 0x238   : > { %v1417_v53 = vpop.permute.xlu0 %1416  ;;  %v1415_v57 = vpop.permute.xlu1 %1414  ;;  %2767 = vmatpush1.bf16.msra.mxu0 %v2766_v54 }
 0x239   : > { %v1424_v58 = vsel %vm4410_vm12, %v1417_v53, %v3796_v63  ;;  %v1423_v15 = vsel %vm4411_vm13, %v1415_v57, %v1417_v53  ;;  %2769 = vmatprep.subr.bf16.mxu0 %v4051_v35  ;;  %vm4418_vm12 = vmmov %vm4416_vm4  ;;  %v4428_v53 = vld [vmem:[#allocation8_spill] sm:$0xff] }
 0x23a   : > { %v2772_v17 = vpack.c.bf16 %v1424_v58, %v4065_v61  ;;  %v2774_v43 = vpack.c.bf16 %v1423_v15, %v4068_v12  ;;  %vm4419_vm13 = vmmov %vm4417_vm11 }
 0x23c   : > { %v1443_v16 = vpop.permute.xlu0 %1442  ;;  %v1469_v3 = vpop.permute.xlu1 %1468  ;;  %2771 = vmatpush1.bf16.msra.mxu0 %v4060_v22 }
 0x23d   : > { %v1450_v41 = vsel %vm4412_vm8, %v1443_v16, %v3810_v18  ;;  %v1476_v45 = vsel %vm4413_vm6, %v1469_v3, %v3825_v38  ;;  %2773 = vmatprep.subr.bf16.mxu0 %v2772_v17  ;;  %vm4420_vm8 = vcmask 121856   ;;  %vm4421_vm6 = vcmask 113664  }
 0x23e   : > { %v2776_v63 = vpack.c.bf16 %v1476_v45, %v1450_v41 }
 0x23f   : > { %2010 = vmatmul.mubr.f32.vlgmr.msra.gmra.mrb[0].mxu0 %v3886_v10 }
 0x240   : > { %v1441_v31 = vpop.permute.xlu0 %1440  ;;  %v1467_v35 = vpop.permute.xlu1 %1466  ;;  %2775 = vmatpush1.bf16.msra.mxu0 %v2774_v43  ;;  %2623 = vmatprep.mubr.msk.f32.mxu0 %vm1941_vm0, %v3895_v52 }
 0x241   : > { %v1449_v22 = vsel %vm4414_vm3, %v1441_v31, %v1443_v16  ;;  %v1475_v61 = vsel %vm4415_vm1, %v1467_v35, %v1469_v3  ;;  %2777 = vmatprep.subr.bf16.mxu0 %v2776_v63  ;;  %vm4422_vm3 = vmmov %vm4420_vm8  ;;  %v4429_v63 = vld [vmem:[#allocation9_spill] sm:$0xff]  ;;  %v4430_v35 = vld [vmem:[#allocation10_spill] sm:$0xff] }
 0x242   : > { %v2778_v18 = vpack.c.bf16 %v1475_v61, %v1449_v22  ;;  %vm4423_vm1 = vmmov %vm4421_vm6 }
 0x244   : > { %v1495_v33 = vpop.permute.xlu0 %1494  ;;  %v1521_v38 = vpop.permute.xlu1 %1520  ;;  %2779 = vmatpush1.bf16.msra.mxu0 %v2778_v18 }
 0x245   : > { %v1502_v12 = vsel %vm4416_vm4, %v1495_v33, %v3842_v2  ;;  %v1528_v10 = vsel %vm4417_vm11, %v1521_v38, %v3850_v14 }
 0x246   : > { %v2780_v6 = vpack.c.bf16 %v1528_v10, %v1502_v12 }
 0x248   : > { %v1493_v44 = vpop.permute.xlu0 %1492  ;;  %v1519_v40 = vpop.permute.xlu1 %1518  ;;  %2781 = vmatprep.subr.bf16.mxu0 %v2780_v6 }
 0x249   : > { %v1501_v52 = vsel %vm4418_vm12, %v1493_v44, %v1495_v33  ;;  %v1527_v24 = vsel %vm4419_vm13, %v1519_v40, %v1521_v38  ;;  %v4431_v40 = vld [vmem:[#allocation11_spill] sm:$0xff] }
 0x24a   : > { %v2782_v13 = vpack.c.bf16 %v1527_v24, %v1501_v52 }
 0x24c   : > { %v1547_v34 = vpop.permute.xlu0 %1546  ;;  %v1573_v36 = vpop.permute.xlu1 %1572  ;;  %2783 = vmatpush1.bf16.msra.mxu0 %v2782_v13 }
 0x24d   : > { %v1554_v51 = vsel %vm4420_vm8, %v1547_v34, %v3859_v46  ;;  %v1580_v2 = vsel %vm4421_vm6, %v1573_v36, %v3871_v9 }
 0x24e   : > { %v2784_v25 = vpack.c.bf16 %v1580_v2, %v1554_v51  ;;  %v4432_v51 = vld [vmem:[#allocation12_spill] sm:$0xff] }
 0x250   : > { %v1545_v14 = vpop.permute.xlu0 %1544  ;;  %v1571_v19 = vpop.permute.xlu1 %1570  ;;  %2785 = vmatprep.subr.bf16.mxu0 %v2784_v25 }
 0x251   : > { %v1553_v4 = vsel %vm4422_vm3, %v1545_v14, %v1547_v34  ;;  %v1579_v59 = vsel %vm4423_vm1, %v1571_v19, %v1573_v36 }
 0x252   : > { %v2786_v11 = vpack.c.bf16 %v1579_v59, %v1553_v4 }
 0x254   : > { %v1599_v39 = vpop.permute.xlu0 %1598  ;;  %v1625_v42 = vpop.permute.xlu1 %1624  ;;  %2787 = vmatpush1.bf16.msra.mxu0 %v2786_v11 }
 0x255   : > { %v1606_v27 = vsel %vm1604_vm14, %v1599_v39, %v3880_v30  ;;  %v1632_v46 = vsel %vm1630_vm15, %v1625_v42, %v4424_v7 }
 0x256   : > { %v2788_v37 = vpack.c.bf16 %v1632_v46, %v1606_v27 }
 0x258   : > { %v1597_v9 = vpop.permute.xlu0 %1596  ;;  %v1623_v48 = vpop.permute.xlu1 %1622  ;;  %2789 = vmatprep.subr.bf16.mxu0 %v2788_v37 }
 0x259   : > { %v1605_v32 = vsel %vm1604_vm14, %v1597_v9, %v1599_v39  ;;  %v1631_v56 = vsel %vm1630_vm15, %v1623_v48, %v1625_v42  ;;  %vm1712_vm14 = vcmask 990208   ;;  %vm1733_vm15 = vcmask 982016   ;;  %v2385_v9 = vld [vmem:[%s4277_s3] sm:$0xff] }
 0x25a   : > { %v2790_v5 = vpack.c.bf16 %v1631_v56, %v1605_v32 }
 0x25c   : > { %v1649_v47 = vpop.permute.xlu0 %1648  ;;  %v1669_v23 = vpop.permute.xlu1 %1668  ;;  %2791 = vmatpush1.bf16.msra.mxu0 %v2790_v5 }
 0x25d   : > { %v1653_v55 = vsel %vm715_vm9, %v1649_v47, %v4425_v21  ;;  %v1673_v30 = vsel %vm736_vm10, %v1669_v23, %v4426_v1 }
 0x25e   : > { %v2792_v62 = vpack.c.bf16 %v1673_v30, %v1653_v55 }
 0x260   : > { %v1647_v49 = vpop.permute.xlu0 %1646  ;;  %v1667_v60 = vpop.permute.xlu1 %1666  ;;  %2793 = vmatprep.subr.bf16.mxu0 %v2792_v62 }
 0x261   : > { %v1652_v8 = vsel %vm715_vm9, %v1647_v49, %v1649_v47  ;;  %v1672_v28 = vsel %vm736_vm10, %v1667_v60, %v1669_v23  ;;  %vm1754_vm9 = vcmask 973824   ;;  %vm1775_vm10 = vcmask 965632  }
 0x262   : > { %v2794_v29 = vpack.c.bf16 %v1672_v28, %v1652_v8 }
 0x264   : > { %v1689_v26 = vpop.permute.xlu0 %1688  ;;  %v1709_v0 = vpop.permute.xlu1 %1708  ;;  %2795 = vmatpush1.bf16.msra.mxu0 %v2794_v29 }
 0x265   : > { %v1693_v54 = vsel %vm282_vm7, %v1689_v26, %v4427_v20  ;;  %v1714_v57 = vsel %vm1712_vm14, %v1709_v0, %v4428_v53 }
 0x266   : > { %v2796_v58 = vpack.c.bf16 %v1714_v57, %v1693_v54 }
 0x268   : > { %v1687_v15 = vpop.permute.xlu0 %1686  ;;  %v1707_v17 = vpop.permute.xlu1 %1706  ;;  %2797 = vmatprep.subr.bf16.mxu0 %v2796_v58 }
 0x269   : > { %v1692_v16 = vsel %vm282_vm7, %v1687_v15, %v1689_v26  ;;  %v1713_v3 = vsel %vm1712_vm14, %v1707_v17, %v1709_v0 }
 0x26a   : > { %v2798_v41 = vpack.c.bf16 %v1713_v3, %v1692_v16 }
 0x26c   : > { %v1730_v45 = vpop.permute.xlu0 %1729  ;;  %v1751_v43 = vpop.permute.xlu1 %1750  ;;  %2799 = vmatpush1.bf16.msra.mxu0 %v2798_v41 }
 0x26d   : > { %v1735_v31 = vsel %vm1733_vm15, %v1730_v45, %v4429_v63  ;;  %v1756_v22 = vsel %vm1754_vm9, %v1751_v43, %v4430_v35 }
 0x26e   : > { %v2800_v61 = vpack.c.bf16 %v1756_v22, %v1735_v31 }
 0x270   : > { %v1728_v18 = vpop.permute.xlu0 %1727  ;;  %v1749_v33 = vpop.permute.xlu1 %1748  ;;  %2801 = vmatprep.subr.bf16.mxu0 %v2800_v61 }
 0x271   : > { %v1734_v38 = vsel %vm1733_vm15, %v1728_v18, %v1730_v45  ;;  %v1755_v12 = vsel %vm1754_vm9, %v1749_v33, %v1751_v43 }
 0x272   : > { %v2802_v10 = vpack.c.bf16 %v1755_v12, %v1734_v38 }
 0x274   : > { %v1772_v6 = vpop.permute.xlu0 %1771  ;;  %v1770_v44 = vpop.permute.xlu1 %1769  ;;  %2803 = vmatpush1.bf16.msra.mxu0 %v2802_v10 }
 0x275   : > { %v1777_v52 = vsel %vm1775_vm10, %v1772_v6, %v4431_v40  ;;  %v1776_v24 = vsel %vm1775_vm10, %v1770_v44, %v1772_v6 }
 0x276   : > { %2048 = vmatprep.subr.mxu0 %v1777_v52  ;;  %v2667_v13 = vpop.f32.mrb[0].mxu1 }
 0x277   : > { %v2668_v34 = vpop.f32.mrb[1].mxu1 }
 0x278   : > { %2049 = vmatpush1.msra.mxu0 %v1776_v24  ;;  %v2669_v36 = vadd.f32 %v2668_v34, %v2667_v13 }
 0x279   : > { %2081 = vmatmul.mubr.f32.vlgmr.msra.gmra.mrb[0].mxu0 %v4432_v51 }
 0x27a   : > { %2459 = vmatprep.mubr.f32.mxu0 %v4384_v50 }
 0x285   : > { %v2390_v2 = vpop.permute.xlu1 %2389  ;;  %v2235_v11 = vpop.permute.xlu0 %2234 }
 0x289   : > { %v1939_v25 = vpop.permute.xlu1 %1938 }
 0x28a   : > { %v2154_v14 = vadd.f32 %v2669_v36, %v1939_v25 }
 0x29a   : > { %v2223_v19 = vpop.f32.mrb[2].mxu1 }
 0x29b   : > { %v2224_v4 = vadd.f32 %v2223_v19, %v2154_v14  ;;  %v2225_v59 = vpop.f32.mrb[3].mxu1 }
 0x29d   : > { %v2229_v43 = vmax.f32 %v2224_v4, 0.0 }
 0x2b0   : > { %v2307_v39 = vpop.f32.mrb[4].mxu1 }
 0x2b1   : > { %v2308_v42 = vadd.f32 %v2307_v39, %v2235_v11  ;;  %v2309_v27 = vpop.f32.mrb[5].mxu1 }
 0x2b2   : > { %v2310_v7 = vadd.f32 %v2309_v27, %v2235_v11 }
 0x2b3   : > { %v2382_v46 = vmax.f32 %v2308_v42, 0.0 }
 0x2b4   : > { %v2383_v37 = vmax.f32 %v2310_v7, 0.0 }
 0x2b6   : > { %2395 = vmatprep.subr.mxu0 %v2383_v37 }
 0x2b7   : > { %2396 = vmatpush1.msra.mxu0 %v2382_v46 }
 0x2b8   : > { %2627 = vmatmul.mubr.msk.f32.vlgmr.msra.gmra.mrb[2].mxu0 %vm1941_vm0, %v2385_v9  ;;  %2703 = vmatprep.subr.mxu0 %v4384_v50 }
 0x2b9   : > { %2705 = vmatprep.mubr.msk.f32.mxu0 %vm3050_vm5, %v4384_v50 }
 0x2c3   : > { %v2378_v48 = vpop.f32.mrb[6].mxu1 }
 0x2c4   : > { %v2379_v32 = vadd.f32 %v2378_v48, %v2235_v11  ;;  %v2702_v56 = vpop.f32.mrb[7].mxu1 }
 0x2c6   : > { %v2384_v5 = vmax.f32 %v2379_v32, 0.0 }
 0x2c8   : > { %2704 = vmatpush3.msra.mxu0 %v2384_v5 }
 0x2c9   : > { %2706 = vmatmul.mubr.msk.f32.vlgmr.msra.gmra.mrb[4].mxu0 %vm1941_vm0, %v2385_v9 }
 0x34c   : > { %v2082_v47 = vpop.f32.mrb[0].mxu0 }
 0x34d   : > { %v2084_v23 = vpop.f32.mrb[1].mxu0  ;;  %v2888_v54 = vadd.f32 %v2082_v47, %v1939_v25 }
 0x34e   : > { %v2889_v53 = vadd.f32 %v2084_v23, %v1939_v25 }
 0x34f   : > { %v2227_v57 = vmax.f32 %v2888_v54, 0.0 }
 0x350   : > { %v2228_v15 = vmax.f32 %v2889_v53, 0.0 }
 0x38b   : > { %v2461_v21 = vpop.f32.mrb[2].mxu0 }
 0x38c   : > { %v2462_v55 = vadd.f32 %v2461_v21, %v2390_v2  ;;  %v2463_v1 = vpop.f32.mrb[3].mxu0 }
 0x38d   : > { %v2464_v30 = vadd.f32 %v2463_v1, %v2390_v2 }
 0x38e   : > { %v2629_v62 = vmul.f32 -1.442695, %v2462_v55 }
 0x38f   : > { %v2630_v49 = vmul.f32 -1.442695, %v2464_v30 }
 0x390   : > { %2966 = vpow2.f32 %v2629_v62 }
 0x391   : > { %2968 = vpow2.f32 %v2630_v49 }
 0x39a   : > { %v2967_v60 = vpop.eup %2966 }
 0x39b   : > { %v2969_v50 = vpop.eup %2968  ;;  %v2545_v8 = vadd.f32 1.0, %v2967_v60 }
 0x39c   : > { %v2546_v28 = vadd.f32 1.0, %v2969_v50  ;;  %v2532_v29 = vpop.f32.mrb[4].mxu0 }
 0x39d   : > { %2970 = vrcp.f32 %v2545_v8  ;;  %v2533_v26 = vadd.f32 %v2532_v29, %v2390_v2  ;;  %v2707_v0 = vpop.f32.mrb[5].mxu0 }
 0x39e   : > { %2972 = vrcp.f32 %v2546_v28 }
 0x39f   : > { %v2631_v20 = vmul.f32 -1.442695, %v2533_v26 }
 0x3a1   : > { %2974 = vpow2.f32 %v2631_v20 }
 0x3a7   : > { %v2971_v58 = vpop.eup %2970 }
 0x3a8   : > { %v2973_v17 = vpop.eup %2972  ;;  %v2554_v16 = vmul.f32 %v2971_v58, %v2227_v57 }
 0x3a9   : > { %v2555_v3 = vmul.f32 %v2973_v17, %v2228_v15 }
 0x3aa   : > { %2557 = vst [vmem:[%s278_s21] sm:$0xff] %v2554_v16 }
 0x3ab   : > { %v2975_v41 = vpop.eup %2974  ;;  %2558 = vst [vmem:[%s278_s21 + $0x8] sm:$0xff] %v2555_v3 }
 0x3ac   : > { %v2547_v45 = vadd.f32 1.0, %v2975_v41 }
 0x3ae   : > { %2976 = vrcp.f32 %v2547_v45 }
 0x3b8   : > { %v2977_v63 = vpop.eup %2976 }
 0x3b9   : > { %v2556_v31 = vmul.f32 %v2977_v63, %v2229_v43 }
 0x3bb   : > { %2559 = vst.msk [vmem:[%s278_s21 + $0x10] sm:$0xff] %vm638_vm2, %v2556_v31 }
 0x3bc PF: > { %s17_s24 = sadd.s32 1, %s2986_s24  }
 0x3bd   : > { %p14_p4 = scmp.ge.s32.totalorder %s17_s24, 4  }
 0x3bf   :  { %16 = sbr.rel (!%p14_p4) target bundleno = 1 (0x1), region = 78 }

</bundles_post_ra>
